<compile_context>
chip_gen: v6e
topology: v6e:2x2x1
jax: 0.10.0
libtpu: 0.0.40
codegen_flags: <defaults>
</compile_context>

<pallas_src>
import functools

import jax
import jax.numpy as jnp
from jax.experimental import pallas as pl
from jax.experimental.pallas import tpu as pltpu


VMEM_LIMIT_BYTES = 48 * 1024 * 1024   # above default scoped VMEM, below physical

# Tile preferences (MXU / lane aligned; fall back to full dims at toy sizes).
MATMUL_TM, MATMUL_TN, MATMUL_TK = 256, 256, 512
MLP_TM, MLP_TH = 256, 512
ATTN_TQ, ATTN_TK = 256, 256
NORM_TM = 256
ROPE_TS = 256


def _tile(dim, pref):
    """Largest usable tile: `pref` if it evenly divides `dim`, else full dim."""
    if dim <= pref or dim % pref != 0:
        return dim
    return pref


# ----------------------------- tiled matmul --------------------------------

def _matmul_kernel(x_ref, w_ref, o_ref, acc_ref):
    @pl.when(pl.program_id(2) == 0)
    def _():
        acc_ref[...] = jnp.zeros_like(acc_ref)
    acc_ref[...] += jnp.dot(x_ref[...], w_ref[...],
                            preferred_element_type=jnp.float32)

    @pl.when(pl.program_id(2) == pl.num_programs(2) - 1)
    def _():
        o_ref[...] = acc_ref[...].astype(o_ref.dtype)


def _matmul_res_kernel(x_ref, w_ref, r_ref, o_ref, acc_ref):
    @pl.when(pl.program_id(2) == 0)
    def _():
        acc_ref[...] = jnp.zeros_like(acc_ref)
    acc_ref[...] += jnp.dot(x_ref[...], w_ref[...],
                            preferred_element_type=jnp.float32)

    @pl.when(pl.program_id(2) == pl.num_programs(2) - 1)
    def _():
        o_ref[...] = (acc_ref[...] +
                      r_ref[...].astype(jnp.float32)).astype(o_ref.dtype)


def pallas_matmul(x, w, *, out_dtype=None, residual=None):
    """x: (M, K), w: (K, N) -> (M, N).  K-axis accumulated in f32 scratch.

    If `residual` (M, N) is given, the residual add is fused in the epilogue."""
    M, K = x.shape
    _, N = w.shape
    if out_dtype is None:
        out_dtype = x.dtype
    tm, tn, tk = _tile(M, MATMUL_TM), _tile(N, MATMUL_TN), _tile(K, MATMUL_TK)
    grid = (M // tm, N // tn, K // tk)

    in_specs = [pl.BlockSpec((tm, tk), lambda i, j, k: (i, k)),
                pl.BlockSpec((tk, tn), lambda i, j, k: (k, j))]
    if residual is not None:
        in_specs.append(pl.BlockSpec((tm, tn), lambda i, j, k: (i, j)))
        kernel = _matmul_res_kernel
        args = (x, w, residual)
    else:
        kernel = _matmul_kernel
        args = (x, w)

    return pl.pallas_call(
        kernel,
        out_shape=jax.ShapeDtypeStruct((M, N), out_dtype),
        grid=grid,
        in_specs=in_specs,
        out_specs=pl.BlockSpec((tm, tn), lambda i, j, k: (i, j)),
        scratch_shapes=[pltpu.VMEM((tm, tn), jnp.float32)],
        compiler_params=pltpu.CompilerParams(
            dimension_semantics=("parallel", "parallel", "arbitrary"),
            vmem_limit_bytes=VMEM_LIMIT_BYTES),
    )(*args)


# ------------------------------- RMSNorm ------------------------------------

def _rmsnorm_kernel(x_ref, w_ref, o_ref, *, eps):
    x = x_ref[...].astype(jnp.float32)
    ms = jnp.mean(x * x, axis=-1, keepdims=True)
    o_ref[...] = (x * jax.lax.rsqrt(ms + eps) * w_ref[...]).astype(o_ref.dtype)


def pallas_rmsnorm(x2d, w, eps):
    """x2d: (M, E), w: (E,) f32 -> (M, E) in x2d.dtype; norm math in f32."""
    M, E = x2d.shape
    tm = _tile(M, NORM_TM)
    return pl.pallas_call(
        functools.partial(_rmsnorm_kernel, eps=eps),
        out_shape=jax.ShapeDtypeStruct((M, E), x2d.dtype),
        grid=(M // tm,),
        in_specs=[pl.BlockSpec((tm, E), lambda i: (i, 0)),
                  pl.BlockSpec((1, E), lambda i: (0, 0))],
        out_specs=pl.BlockSpec((tm, E), lambda i: (i, 0)),
        compiler_params=pltpu.CompilerParams(
            dimension_semantics=("parallel",),
            vmem_limit_bytes=VMEM_LIMIT_BYTES),
    )(x2d, w.reshape(1, E))


# ------------------------------ fused MLP -----------------------------------

def _mlp_kernel(x_ref, wg_ref, wu_ref, wd_ref, r_ref, o_ref, acc_ref):
    @pl.when(pl.program_id(1) == 0)
    def _():
        acc_ref[...] = jnp.zeros_like(acc_ref)

    x = x_ref[...]
    g = jnp.dot(x, wg_ref[...], preferred_element_type=jnp.float32)
    u = jnp.dot(x, wu_ref[...], preferred_element_type=jnp.float32)
    h = (g * jax.nn.sigmoid(g)) * u                        # SiLU(gate)*up, f32
    acc_ref[...] += jnp.dot(h.astype(wd_ref.dtype), wd_ref[...],
                            preferred_element_type=jnp.float32)

    @pl.when(pl.program_id(1) == pl.num_programs(1) - 1)
    def _():
        o_ref[...] = (acc_ref[...] +
                      r_ref[...].astype(jnp.float32)).astype(o_ref.dtype)


def pallas_mlp(x2d, wg, wu, wd, residual):
    """Fused SwiGLU MLP with residual add. x2d:(M,E); wg,wu:(E,H); wd:(H,E)."""
    M, E = x2d.shape
    H = wg.shape[1]
    tm, th = _tile(M, MLP_TM), _tile(H, MLP_TH)
    return pl.pallas_call(
        _mlp_kernel,
        out_shape=jax.ShapeDtypeStruct((M, E), x2d.dtype),
        grid=(M // tm, H // th),
        in_specs=[pl.BlockSpec((tm, E), lambda i, j: (i, 0)),
                  pl.BlockSpec((E, th), lambda i, j: (0, j)),
                  pl.BlockSpec((E, th), lambda i, j: (0, j)),
                  pl.BlockSpec((th, E), lambda i, j: (j, 0)),
                  pl.BlockSpec((tm, E), lambda i, j: (i, 0))],
        out_specs=pl.BlockSpec((tm, E), lambda i, j: (i, 0)),
        scratch_shapes=[pltpu.VMEM((tm, E), jnp.float32)],
        compiler_params=pltpu.CompilerParams(
            dimension_semantics=("parallel", "arbitrary"),
            vmem_limit_bytes=VMEM_LIMIT_BYTES),
    )(x2d, wg, wu, wd, residual)


# ------------------------------- RoPE ----------------------------------------

def _rope_kernel(x_ref, cos_ref, sin_ref, rot_ref, o_ref):
    x = x_ref[...].astype(jnp.float32)
    # Interleaved-pair rotation: x*cos + (x @ P)*sin, P on the MXU
    # ((x@P)[2i] = -x[2i+1], (x@P)[2i+1] = x[2i]).
    xr = jnp.dot(x, rot_ref[...], preferred_element_type=jnp.float32)
    o_ref[...] = (x * cos_ref[...] + xr * sin_ref[...]).astype(o_ref.dtype)


def pallas_rope(x, cos, sin, rot):
    """x: (N, S, Dh) -> RoPE-rotated (N, S, Dh). Math in f32, output x.dtype."""
    N, S, Dh = x.shape
    ts = _tile(S, ROPE_TS)
    return pl.pallas_call(
        _rope_kernel,
        out_shape=jax.ShapeDtypeStruct((N, S, Dh), x.dtype),
        grid=(N, S // ts),
        in_specs=[pl.BlockSpec((None, ts, Dh), lambda n, si: (n, si, 0)),
                  pl.BlockSpec((ts, Dh), lambda n, si: (si, 0)),
                  pl.BlockSpec((ts, Dh), lambda n, si: (si, 0)),
                  pl.BlockSpec((Dh, Dh), lambda n, si: (0, 0))],
        out_specs=pl.BlockSpec((None, ts, Dh), lambda n, si: (n, si, 0)),
        compiler_params=pltpu.CompilerParams(
            dimension_semantics=("parallel", "parallel"),
            vmem_limit_bytes=VMEM_LIMIT_BYTES),
    )(x, cos, sin, rot)


# --------------------------- flash attention ---------------------------------

def _flash_attn_kernel(q_ref, k_ref, v_ref, o_ref, m_sc, l_sc, acc_sc,
                       *, scale, tq, tk):
    qi = pl.program_id(3)
    kvi = pl.program_id(4)

    @pl.when(kvi == 0)
    def _init():
        m_sc[...] = jnp.full_like(m_sc, -1e30)
        l_sc[...] = jnp.zeros_like(l_sc)
        acc_sc[...] = jnp.zeros_like(acc_sc)

    # Causal block skip: only process KV blocks not entirely above the diagonal.
    @pl.when(kvi * tk <= qi * tq + (tq - 1))
    def _compute():
        s = jax.lax.dot_general(q_ref[...], k_ref[...], (((1,), (1,)), ((), ())),
                                preferred_element_type=jnp.float32) * scale
        row = qi * tq + jax.lax.broadcasted_iota(jnp.int32, (tq, tk), 0)
        col = kvi * tk + jax.lax.broadcasted_iota(jnp.int32, (tq, tk), 1)
        s = jnp.where(col <= row, s, -1e30)                 # finite mask, no NaNs

        m_prev = m_sc[...]
        m_new = jnp.maximum(m_prev, jnp.max(s, axis=-1, keepdims=True))
        alpha = jnp.exp(m_prev - m_new)
        p = jnp.exp(s - m_new)
        l_sc[...] = alpha * l_sc[...] + jnp.sum(p, axis=-1, keepdims=True)
        acc_sc[...] = alpha * acc_sc[...] + jnp.dot(
            p.astype(v_ref.dtype), v_ref[...], preferred_element_type=jnp.float32)
        m_sc[...] = m_new

    @pl.when(kvi == pl.num_programs(4) - 1)
    def _finalize():
        o_ref[...] = (acc_sc[...] *
                      pl.reciprocal(l_sc[...], approx=True)).astype(o_ref.dtype)


def pallas_flash_attention(q, k, v):
    """q: (B, H, S, Dh); k, v: (B, Hkv, S, Dh) -> (B, H, S, Dh).

    Grid (B, Hkv, group, Sq/tq, Skv/tk): GQA handled via the k/v index_map so
    a KV block index repeats across the `group` axis; the KV axis is innermost
    ("arbitrary") with the online-softmax state held in VMEM scratch."""
    B, H, S, Dh = q.shape
    Hkv = k.shape[1]
    group = H // Hkv
    scale = 1.0 / (Dh ** 0.5)
    tq, tk = _tile(S, ATTN_TQ), _tile(S, ATTN_TK)
    grid = (B, Hkv, group, S // tq, S // tk)

    kernel = functools.partial(_flash_attn_kernel, scale=scale, tq=tq, tk=tk)
    return pl.pallas_call(
        kernel,
        out_shape=jax.ShapeDtypeStruct((B, H, S, Dh), q.dtype),
        grid=grid,
        in_specs=[
            pl.BlockSpec((None, None, tq, Dh),
                         lambda b, hk, g, qi, ki: (b, hk * group + g, qi, 0)),
            pl.BlockSpec((None, None, tk, Dh),
                         lambda b, hk, g, qi, ki: (b, hk, ki, 0)),
            pl.BlockSpec((None, None, tk, Dh),
                         lambda b, hk, g, qi, ki: (b, hk, ki, 0)),
        ],
        out_specs=pl.BlockSpec((None, None, tq, Dh),
                               lambda b, hk, g, qi, ki: (b, hk * group + g, qi, 0)),
        scratch_shapes=[pltpu.VMEM((tq, 1), jnp.float32),     # m
                        pltpu.VMEM((tq, 1), jnp.float32),     # l
                        pltpu.VMEM((tq, Dh), jnp.float32)],   # acc
        compiler_params=pltpu.CompilerParams(
            dimension_semantics=("parallel", "parallel", "parallel",
                                 "parallel", "arbitrary"),
            vmem_limit_bytes=VMEM_LIMIT_BYTES),
    )(q, k, v)


# ------------------------------ JAX glue ------------------------------------

def precompute_freq_cis(dim, max_seq_len):
    rope_base = 500000.0
    assert dim % 2 == 0
    freqs = 1.0 / (rope_base ** (jnp.arange(0, dim, 2, dtype=jnp.float32) / dim))
    t = jnp.arange(max_seq_len, dtype=jnp.float32)
    ang = jnp.outer(t, freqs)                 # (max_seq_len, dim // 2)
    return jnp.cos(ang), jnp.sin(ang)         # polar(1, ang) = cos + i*sin


def rope_rotation_matrix(dh):
    """P with (x @ P)[2i] = -x[2i+1], (x @ P)[2i+1] = x[2i] (interleaved RoPE)."""
    r = jnp.arange(dh)[:, None]
    c = jnp.arange(dh)[None, :]
    plus = ((c == r + 1) & (r % 2 == 0)).astype(jnp.float32)
    minus = ((c == r - 1) & (r % 2 == 1)).astype(jnp.float32)
    return plus - minus


def attention_forward(p, x_res, x_norm, rope, num_heads, num_kv_heads):
    B, S, E = x_norm.shape
    Dh = E // num_heads
    kv_dim = E * num_kv_heads // num_heads
    qkv = pallas_matmul(x_norm.reshape(B * S, E), p["w_in"]).reshape(B, S, -1)
    q = qkv[..., :E].reshape(B, S, num_heads, Dh).transpose(0, 2, 1, 3)
    k = qkv[..., E:E + kv_dim].reshape(B, S, num_kv_heads, Dh).transpose(0, 2, 1, 3)
    v = qkv[..., E + kv_dim:].reshape(B, S, num_kv_heads, Dh).transpose(0, 2, 1, 3)
    # RoPE applied ONCE per tensor (not per flash block) in a tiny Pallas kernel.
    cos, sin, rot = rope["cos"][:S], rope["sin"][:S], rope["rot"]
    q = pallas_rope(q.reshape(B * num_heads, S, Dh), cos, sin,
                    rot).reshape(B, num_heads, S, Dh)
    k = pallas_rope(k.reshape(B * num_kv_heads, S, Dh), cos, sin,
                    rot).reshape(B, num_kv_heads, S, Dh)
    o = pallas_flash_attention(q, k, v)
    # Reference (use_sdpa=True branch) does o.reshape(input.shape) directly on
    # the (B, H, S, Dh) tensor -- replicate that row-major reshape exactly.
    o = o.reshape(B, S, E)
    # Residual add fused in the out-projection epilogue.
    return pallas_matmul(o.reshape(B * S, E), p["w_out"],
                         residual=x_res.reshape(B * S, E)).reshape(B, S, E)


def block_forward(p, x, rope, num_heads, num_kv_heads, eps):
    B, S, E = x.shape
    xn = pallas_rmsnorm(x.reshape(B * S, E), p["attn_norm_w"], eps).reshape(B, S, E)
    h = attention_forward(p["attn"], x, xn, rope, num_heads, num_kv_heads)
    hn = pallas_rmsnorm(h.reshape(B * S, E), p["mlp_norm_w"], eps)
    out = pallas_mlp(hn, p["mlp"]["w_gate"], p["mlp"]["w_up"], p["mlp"]["w_down"],
                     residual=h.reshape(B * S, E)).reshape(B, S, E)
    return out


def llama_forward(params, idxs, cfg):
    # is_first_microbatch is unused by the reference forward.
    # TODO(synk): embedding gather stays an XLA op (no rectangular BlockSpec fit).
    x = params["embedding"][idxs]                       # (B, S, E) bf16
    rope = params["rope"]
    for p in params["layers"]:
        x = block_forward(p, x, rope, cfg["num_heads"], cfg["num_kv_heads"],
                          cfg["eps"])
    B, S, E = x.shape
    xn = pallas_rmsnorm(x.reshape(B * S, E), params["norm_w"], cfg["eps"])
    logits = pallas_matmul(xn, params["lm_head_w"],
                           out_dtype=jnp.float32).reshape(B, S, -1)
    return logits


def init_params(key, cfg, param_dtype=jnp.bfloat16):
    V, E = cfg["vocab_size"], cfg["embedding_dim"]
    H, L = cfg["hidden_dim"], cfg["num_layers"]
    nh, nkv = cfg["num_heads"], cfg["num_kv_heads"]
    kv_dim = E * nkv // nh
    Dh = E // nh
    keys = jax.random.split(key, 2 + 5 * L)

    def w(k, shape):                                    # stored in (K, N) layout
        return (jax.random.normal(k, shape, jnp.float32) * 0.02).astype(param_dtype)

    params = {
        "embedding": w(keys[0], (V, E)),
        "lm_head_w": w(keys[1], (E, V)),
        "norm_w": jnp.ones((E,), jnp.float32),
        "layers": [],
    }
    cos_h, sin_h = precompute_freq_cis(Dh, cfg["max_seq_len"])
    params["rope"] = {
        "cos": jnp.repeat(cos_h, 2, axis=-1),           # (S, Dh), pair-duplicated
        "sin": jnp.repeat(sin_h, 2, axis=-1),
        "rot": rope_rotation_matrix(Dh),                # (Dh, Dh) f32
    }
    ki = 2
    for _ in range(L):
        lk = keys[ki:ki + 5]
        ki += 5
        params["layers"].append({
            "attn_norm_w": jnp.ones((E,), jnp.float32),
            "mlp_norm_w": jnp.ones((E,), jnp.float32),
            "attn": {"w_in": w(lk[0], (E, E + 2 * kv_dim)),
                     "w_out": w(lk[1], (E, E))},
            "mlp": {"w_up": w(lk[2], (E, H)),
                    "w_gate": w(lk[3], (E, H)),
                    "w_down": w(lk[4], (H, E))},
        })
    return params


if __name__ == "__main__":
    cfg = dict(vocab_size=128, embedding_dim=32, hidden_dim=64, num_layers=2,
               num_heads=4, num_kv_heads=2, max_seq_len=8, eps=1e-5)
    key = jax.random.PRNGKey(0)
    pkey, ikey = jax.random.split(key)
    params = init_params(pkey, cfg)

    B, S = 2, cfg["max_seq_len"]   # seq len must equal max_seq_len (as in ref)
    idxs = jax.random.randint(ikey, (B, S), 0, cfg["vocab_size"], dtype=jnp.int32)

    fwd = jax.jit(functools.partial(llama_forward, cfg=cfg))
    logits = fwd(params, idxs)
    jax.block_until_ready(logits)
    assert logits.shape == (B, S, cfg["vocab_size"])
    assert logits.dtype == jnp.float32
    assert bool(jnp.isfinite(logits).all())
    print("KERNEL_OK")
</pallas_src>

<mosaic_0001>
module attributes {stable_mosaic.version = 11 : i64} {
  func.func @_matmul_kernel(%arg0: i32, %arg1: i32, %arg2: i32, %arg3: memref<16x32xbf16, #tpu.memory_space<vmem>>, %arg4: memref<32x64xbf16, #tpu.memory_space<vmem>>, %arg5: memref<16x64xbf16, #tpu.memory_space<vmem>>, %arg6: memref<16x64xf32, #tpu.memory_space<vmem>>) attributes {dimension_semantics = [#tpu.dimension_semantics<parallel>, #tpu.dimension_semantics<parallel>, #tpu.dimension_semantics<arbitrary>], iteration_bounds = array<i64: 1, 1, 1>, scalar_prefetch = 0 : i64, scratch_operands = 1 : i64, tpu.core_type = #tpu.core_type<tc>, window_params = [{transform_indices = @transform_0, window_bounds = array<i64: 16, 32>}, {transform_indices = @transform_1, window_bounds = array<i64: 32, 64>}, {transform_indices = @transform_2, window_bounds = array<i64: 16, 64>}]} {
    %c0_i32 = arith.constant 0 : i32
    %0 = arith.cmpi eq, %arg2, %c0_i32 : i32
    %1 = arith.extui %0 : i1 to i32
    %c0_i32_0 = arith.constant 0 : i32
    %2 = arith.cmpi ne, %1, %c0_i32_0 : i32
    scf.if %2 {
      %cst_10 = arith.constant 0.000000e+00 : f32
      %12 = vector.broadcast %cst_10 : f32 to vector<16x64xf32>
      %c0_11 = arith.constant 0 : index
      %c0_12 = arith.constant 0 : index
      %13 = vector.load %arg6[%c0_11, %c0_12] : memref<16x64xf32, #tpu.memory_space<vmem>>, vector<16x64xf32>
      tpu.vector_store %arg6[%c0_11, %c0_12], %12 {strides = array<i32>} : memref<16x64xf32, #tpu.memory_space<vmem>>, vector<16x64xf32>,
    } else {
    }
    %c0 = arith.constant 0 : index
    %c0_1 = arith.constant 0 : index
    %3 = vector.load %arg6[%c0, %c0_1] : memref<16x64xf32, #tpu.memory_space<vmem>>, vector<16x64xf32>
    %c0_2 = arith.constant 0 : index
    %c0_3 = arith.constant 0 : index
    %4 = vector.load %arg3[%c0_2, %c0_3] : memref<16x32xbf16, #tpu.memory_space<vmem>>, vector<16x32xbf16>
    %c0_4 = arith.constant 0 : index
    %c0_5 = arith.constant 0 : index
    %5 = vector.load %arg4[%c0_4, %c0_5] : memref<32x64xbf16, #tpu.memory_space<vmem>>, vector<32x64xbf16>
    %cst = arith.constant dense<0.000000e+00> : vector<16x64xf32>
    %6 = tpu.matmul %4, %5, %cst {dimension_numbers = #tpu.dot_dimension_numbers<[1], [0], [0], [1], [0, 0, 1, 1], [], []>} : vector<16x32xbf16>, vector<32x64xbf16>, vector<16x64xf32> -> vector<16x64xf32>
    %7 = arith.addf %3, %6 : vector<16x64xf32>
    %c0_6 = arith.constant 0 : index
    %c0_7 = arith.constant 0 : index
    %8 = vector.load %arg6[%c0_6, %c0_7] : memref<16x64xf32, #tpu.memory_space<vmem>>, vector<16x64xf32>
    tpu.vector_store %arg6[%c0_6, %c0_7], %7 {strides = array<i32>} : memref<16x64xf32, #tpu.memory_space<vmem>>, vector<16x64xf32>,
    %c0_i32_8 = arith.constant 0 : i32
    %9 = arith.cmpi eq, %arg2, %c0_i32_8 : i32
    %10 = arith.extui %9 : i1 to i32
    %c0_i32_9 = arith.constant 0 : i32
    %11 = arith.cmpi ne, %10, %c0_i32_9 : i32
    scf.if %11 {
      %c0_10 = arith.constant 0 : index
      %c0_11 = arith.constant 0 : index
      %12 = vector.load %arg6[%c0_10, %c0_11] : memref<16x64xf32, #tpu.memory_space<vmem>>, vector<16x64xf32>
      %13 = arith.truncf %12 : vector<16x64xf32> to vector<16x64xbf16>
      %c0_12 = arith.constant 0 : index
      %c0_13 = arith.constant 0 : index
      %14 = vector.load %arg5[%c0_12, %c0_13] : memref<16x64xbf16, #tpu.memory_space<vmem>>, vector<16x64xbf16>
      tpu.vector_store %arg5[%c0_12, %c0_13], %13 {strides = array<i32>} : memref<16x64xbf16, #tpu.memory_space<vmem>>, vector<16x64xbf16>,
    } else {
    }
    return
  }
  func.func @transform_0(%arg0: i32, %arg1: i32, %arg2: i32) -> (i32, i32) {
    %c0_i32 = arith.constant 0 : i32
    return %arg0, %arg2 : i32, i32
  }
  func.func @transform_1(%arg0: i32, %arg1: i32, %arg2: i32) -> (i32, i32) {
    %c0_i32 = arith.constant 0 : i32
    return %arg2, %arg1 : i32, i32
  }
  func.func @transform_2(%arg0: i32, %arg1: i32, %arg2: i32) -> (i32, i32) {
    %c0_i32 = arith.constant 0 : i32
    return %arg0, %arg1 : i32, i32
  }
}

module attributes {stable_mosaic.version = 11 : i64} {
  func.func @_rope_kernel(%arg0: i32, %arg1: i32, %arg2: memref<1x8x8xbf16, #tpu.memory_space<vmem>>, %arg3: memref<8x8xf32, #tpu.memory_space<vmem>>, %arg4: memref<8x8xf32, #tpu.memory_space<vmem>>, %arg5: memref<8x8xf32, #tpu.memory_space<vmem>>, %arg6: memref<1x8x8xbf16, #tpu.memory_space<vmem>>) attributes {dimension_semantics = [#tpu.dimension_semantics<parallel>, #tpu.dimension_semantics<parallel>], iteration_bounds = array<i64: 8, 1>, scalar_prefetch = 0 : i64, scratch_operands = 0 : i64, tpu.core_type = #tpu.core_type<tc>, window_params = [{transform_indices = @transform_0, window_bounds = array<i64: 1, 8, 8>}, {transform_indices = @transform_1, window_bounds = array<i64: 8, 8>}, {transform_indices = @transform_2, window_bounds = array<i64: 8, 8>}, {pipeline_mode = #tpu.pipeline_mode<synchronous>, transform_indices = @transform_3, window_bounds = array<i64: 8, 8>}, {transform_indices = @transform_4, window_bounds = array<i64: 1, 8, 8>}]} {
    %c0 = arith.constant 0 : index
    %c0_0 = arith.constant 0 : index
    %c0_1 = arith.constant 0 : index
    %0 = vector.load %arg2[%c0, %c0_0, %c0_1] : memref<1x8x8xbf16, #tpu.memory_space<vmem>>, vector<1x8x8xbf16>
    %1 = vector.shape_cast %0 : vector<1x8x8xbf16> to vector<8x8xbf16>
    %2 = arith.extf %1 : vector<8x8xbf16> to vector<8x8xf32>
    %c0_2 = arith.constant 0 : index
    %c0_3 = arith.constant 0 : index
    %3 = vector.load %arg5[%c0_2, %c0_3] : memref<8x8xf32, #tpu.memory_space<vmem>>, vector<8x8xf32>
    %cst = arith.constant dense<0.000000e+00> : vector<8x8xf32>
    %4 = tpu.matmul %2, %3, %cst {dimension_numbers = #tpu.dot_dimension_numbers<[1], [0], [0], [1], [0, 0, 1, 1], [], []>} : vector<8x8xf32>, vector<8x8xf32>, vector<8x8xf32> -> vector<8x8xf32>
    %c0_4 = arith.constant 0 : index
    %c0_5 = arith.constant 0 : index
    %5 = vector.load %arg3[%c0_4, %c0_5] : memref<8x8xf32, #tpu.memory_space<vmem>>, vector<8x8xf32>
    %6 = arith.mulf %2, %5 : vector<8x8xf32>
    %c0_6 = arith.constant 0 : index
    %c0_7 = arith.constant 0 : index
    %7 = vector.load %arg4[%c0_6, %c0_7] : memref<8x8xf32, #tpu.memory_space<vmem>>, vector<8x8xf32>
    %8 = arith.mulf %4, %7 : vector<8x8xf32>
    %9 = arith.addf %6, %8 : vector<8x8xf32>
    %10 = arith.truncf %9 : vector<8x8xf32> to vector<8x8xbf16>
    %c0_8 = arith.constant 0 : index
    %c0_9 = arith.constant 0 : index
    %c0_10 = arith.constant 0 : index
    %11 = vector.load %arg6[%c0_8, %c0_9, %c0_10] : memref<1x8x8xbf16, #tpu.memory_space<vmem>>, vector<1x8x8xbf16>
    %12 = vector.shape_cast %11 : vector<1x8x8xbf16> to vector<8x8xbf16>
    %13 = vector.shape_cast %10 : vector<8x8xbf16> to vector<1x8x8xbf16>
    tpu.vector_store %arg6[%c0_8, %c0_9, %c0_10], %13 {strides = array<i32>} : memref<1x8x8xbf16, #tpu.memory_space<vmem>>, vector<1x8x8xbf16>,
    return
  }
  func.func @transform_0(%arg0: i32, %arg1: i32) -> (i32, i32, i32) {
    %c0_i32 = arith.constant 0 : i32
    %c0_i32_0 = arith.constant 0 : i32
    return %arg0, %arg1, %c0_i32 : i32, i32, i32
  }
  func.func @transform_1(%arg0: i32, %arg1: i32) -> (i32, i32) {
    %c0_i32 = arith.constant 0 : i32
    %c0_i32_0 = arith.constant 0 : i32
    return %arg1, %c0_i32 : i32, i32
  }
  func.func @transform_2(%arg0: i32, %arg1: i32) -> (i32, i32) {
    %c0_i32 = arith.constant 0 : i32
    %c0_i32_0 = arith.constant 0 : i32
    return %arg1, %c0_i32 : i32, i32
  }
  func.func @transform_3(%arg0: i32, %arg1: i32) -> (i32, i32) {
    %c0_i32 = arith.constant 0 : i32
    %c0_i32_0 = arith.constant 0 : i32
    %c0_i32_1 = arith.constant 0 : i32
    return %c0_i32, %c0_i32_0 : i32, i32
  }
  func.func @transform_4(%arg0: i32, %arg1: i32) -> (i32, i32, i32) {
    %c0_i32 = arith.constant 0 : i32
    %c0_i32_0 = arith.constant 0 : i32
    return %arg0, %arg1, %c0_i32 : i32, i32, i32
  }
}

module attributes {stable_mosaic.version = 11 : i64} {
  func.func @_rmsnorm_kernel(%arg0: i32, %arg1: memref<16x32xbf16, #tpu.memory_space<vmem>>, %arg2: memref<1x32xf32, #tpu.memory_space<vmem>>, %arg3: memref<16x32xbf16, #tpu.memory_space<vmem>>) attributes {dimension_semantics = [#tpu.dimension_semantics<parallel>], iteration_bounds = array<i64: 1>, scalar_prefetch = 0 : i64, scratch_operands = 0 : i64, tpu.core_type = #tpu.core_type<tc>, window_params = [{transform_indices = @transform_0, window_bounds = array<i64: 16, 32>}, {pipeline_mode = #tpu.pipeline_mode<synchronous>, transform_indices = @transform_1, window_bounds = array<i64: 1, 32>}, {transform_indices = @transform_2, window_bounds = array<i64: 16, 32>}]} {
    %c0 = arith.constant 0 : index
    %c0_0 = arith.constant 0 : index
    %0 = vector.load %arg1[%c0, %c0_0] : memref<16x32xbf16, #tpu.memory_space<vmem>>, vector<16x32xbf16>
    %1 = arith.extf %0 : vector<16x32xbf16> to vector<16x32xf32>
    %2 = arith.mulf %1, %1 : vector<16x32xf32>
    %cst = arith.constant dense<0.000000e+00> : vector<16xf32>
    %3 = vector.multi_reduction <add>, %2, %cst [1] : vector<16x32xf32> to vector<16xf32>
    %4 = vector.shape_cast %3 : vector<16xf32> to vector<16x1xf32>
    %cst_1 = arith.constant 3.200000e+01 : f32
    %5 = vector.broadcast %cst_1 : f32 to vector<16x1xf32>
    %6 = arith.divf %4, %5 : vector<16x1xf32>
    %cst_2 = arith.constant 9.99999974E-6 : f32
    %7 = vector.broadcast %cst_2 : f32 to vector<16x1xf32>
    %8 = arith.addf %6, %7 : vector<16x1xf32>
    %9 = math.rsqrt %8 : vector<16x1xf32>
    %10 = vector.broadcast %9 : vector<16x1xf32> to vector<16x32xf32>
    %11 = arith.mulf %1, %10 : vector<16x32xf32>
    %c0_3 = arith.constant 0 : index
    %c0_4 = arith.constant 0 : index
    %12 = vector.load %arg2[%c0_3, %c0_4] : memref<1x32xf32, #tpu.memory_space<vmem>>, vector<1x32xf32>
    %13 = vector.broadcast %12 : vector<1x32xf32> to vector<16x32xf32>
    %14 = arith.mulf %11, %13 : vector<16x32xf32>
    %15 = arith.truncf %14 : vector<16x32xf32> to vector<16x32xbf16>
    %c0_5 = arith.constant 0 : index
    %c0_6 = arith.constant 0 : index
    %16 = vector.load %arg3[%c0_5, %c0_6] : memref<16x32xbf16, #tpu.memory_space<vmem>>, vector<16x32xbf16>
    tpu.vector_store %arg3[%c0_5, %c0_6], %15 {strides = array<i32>} : memref<16x32xbf16, #tpu.memory_space<vmem>>, vector<16x32xbf16>,
    return
  }
  func.func @transform_0(%arg0: i32) -> (i32, i32) {
    %c0_i32 = arith.constant 0 : i32
    %c0_i32_0 = arith.constant 0 : i32
    return %arg0, %c0_i32 : i32, i32
  }
  func.func @transform_1(%arg0: i32) -> (i32, i32) {
    %c0_i32 = arith.constant 0 : i32
    %c0_i32_0 = arith.constant 0 : i32
    %c0_i32_1 = arith.constant 0 : i32
    return %c0_i32, %c0_i32_0 : i32, i32
  }
  func.func @transform_2(%arg0: i32) -> (i32, i32) {
    %c0_i32 = arith.constant 0 : i32
    %c0_i32_0 = arith.constant 0 : i32
    return %arg0, %c0_i32 : i32, i32
  }
}

module attributes {stable_mosaic.version = 11 : i64} {
  func.func @_rope_kernel(%arg0: i32, %arg1: i32, %arg2: memref<1x8x8xbf16, #tpu.memory_space<vmem>>, %arg3: memref<8x8xf32, #tpu.memory_space<vmem>>, %arg4: memref<8x8xf32, #tpu.memory_space<vmem>>, %arg5: memref<8x8xf32, #tpu.memory_space<vmem>>, %arg6: memref<1x8x8xbf16, #tpu.memory_space<vmem>>) attributes {dimension_semantics = [#tpu.dimension_semantics<parallel>, #tpu.dimension_semantics<parallel>], iteration_bounds = array<i64: 4, 1>, scalar_prefetch = 0 : i64, scratch_operands = 0 : i64, tpu.core_type = #tpu.core_type<tc>, window_params = [{transform_indices = @transform_0, window_bounds = array<i64: 1, 8, 8>}, {transform_indices = @transform_1, window_bounds = array<i64: 8, 8>}, {transform_indices = @transform_2, window_bounds = array<i64: 8, 8>}, {pipeline_mode = #tpu.pipeline_mode<synchronous>, transform_indices = @transform_3, window_bounds = array<i64: 8, 8>}, {transform_indices = @transform_4, window_bounds = array<i64: 1, 8, 8>}]} {
    %c0 = arith.constant 0 : index
    %c0_0 = arith.constant 0 : index
    %c0_1 = arith.constant 0 : index
    %0 = vector.load %arg2[%c0, %c0_0, %c0_1] : memref<1x8x8xbf16, #tpu.memory_space<vmem>>, vector<1x8x8xbf16>
    %1 = vector.shape_cast %0 : vector<1x8x8xbf16> to vector<8x8xbf16>
    %2 = arith.extf %1 : vector<8x8xbf16> to vector<8x8xf32>
    %c0_2 = arith.constant 0 : index
    %c0_3 = arith.constant 0 : index
    %3 = vector.load %arg5[%c0_2, %c0_3] : memref<8x8xf32, #tpu.memory_space<vmem>>, vector<8x8xf32>
    %cst = arith.constant dense<0.000000e+00> : vector<8x8xf32>
    %4 = tpu.matmul %2, %3, %cst {dimension_numbers = #tpu.dot_dimension_numbers<[1], [0], [0], [1], [0, 0, 1, 1], [], []>} : vector<8x8xf32>, vector<8x8xf32>, vector<8x8xf32> -> vector<8x8xf32>
    %c0_4 = arith.constant 0 : index
    %c0_5 = arith.constant 0 : index
    %5 = vector.load %arg3[%c0_4, %c0_5] : memref<8x8xf32, #tpu.memory_space<vmem>>, vector<8x8xf32>
    %6 = arith.mulf %2, %5 : vector<8x8xf32>
    %c0_6 = arith.constant 0 : index
    %c0_7 = arith.constant 0 : index
    %7 = vector.load %arg4[%c0_6, %c0_7] : memref<8x8xf32, #tpu.memory_space<vmem>>, vector<8x8xf32>
    %8 = arith.mulf %4, %7 : vector<8x8xf32>
    %9 = arith.addf %6, %8 : vector<8x8xf32>
    %10 = arith.truncf %9 : vector<8x8xf32> to vector<8x8xbf16>
    %c0_8 = arith.constant 0 : index
    %c0_9 = arith.constant 0 : index
    %c0_10 = arith.constant 0 : index
    %11 = vector.load %arg6[%c0_8, %c0_9, %c0_10] : memref<1x8x8xbf16, #tpu.memory_space<vmem>>, vector<1x8x8xbf16>
    %12 = vector.shape_cast %11 : vector<1x8x8xbf16> to vector<8x8xbf16>
    %13 = vector.shape_cast %10 : vector<8x8xbf16> to vector<1x8x8xbf16>
    tpu.vector_store %arg6[%c0_8, %c0_9, %c0_10], %13 {strides = array<i32>} : memref<1x8x8xbf16, #tpu.memory_space<vmem>>, vector<1x8x8xbf16>,
    return
  }
  func.func @transform_0(%arg0: i32, %arg1: i32) -> (i32, i32, i32) {
    %c0_i32 = arith.constant 0 : i32
    %c0_i32_0 = arith.constant 0 : i32
    return %arg0, %arg1, %c0_i32 : i32, i32, i32
  }
  func.func @transform_1(%arg0: i32, %arg1: i32) -> (i32, i32) {
    %c0_i32 = arith.constant 0 : i32
    %c0_i32_0 = arith.constant 0 : i32
    return %arg1, %c0_i32 : i32, i32
  }
  func.func @transform_2(%arg0: i32, %arg1: i32) -> (i32, i32) {
    %c0_i32 = arith.constant 0 : i32
    %c0_i32_0 = arith.constant 0 : i32
    return %arg1, %c0_i32 : i32, i32
  }
  func.func @transform_3(%arg0: i32, %arg1: i32) -> (i32, i32) {
    %c0_i32 = arith.constant 0 : i32
    %c0_i32_0 = arith.constant 0 : i32
    %c0_i32_1 = arith.constant 0 : i32
    return %c0_i32, %c0_i32_0 : i32, i32
  }
  func.func @transform_4(%arg0: i32, %arg1: i32) -> (i32, i32, i32) {
    %c0_i32 = arith.constant 0 : i32
    %c0_i32_0 = arith.constant 0 : i32
    return %arg0, %arg1, %c0_i32 : i32, i32, i32
  }
}

module attributes {stable_mosaic.version = 11 : i64} {
  func.func @_matmul_res_kernel(%arg0: i32, %arg1: i32, %arg2: i32, %arg3: memref<16x32xbf16, #tpu.memory_space<vmem>>, %arg4: memref<32x32xbf16, #tpu.memory_space<vmem>>, %arg5: memref<16x32xbf16, #tpu.memory_space<vmem>>, %arg6: memref<16x32xbf16, #tpu.memory_space<vmem>>, %arg7: memref<16x32xf32, #tpu.memory_space<vmem>>) attributes {dimension_semantics = [#tpu.dimension_semantics<parallel>, #tpu.dimension_semantics<parallel>, #tpu.dimension_semantics<arbitrary>], iteration_bounds = array<i64: 1, 1, 1>, scalar_prefetch = 0 : i64, scratch_operands = 1 : i64, tpu.core_type = #tpu.core_type<tc>, window_params = [{transform_indices = @transform_0, window_bounds = array<i64: 16, 32>}, {transform_indices = @transform_1, window_bounds = array<i64: 32, 32>}, {transform_indices = @transform_2, window_bounds = array<i64: 16, 32>}, {transform_indices = @transform_3, window_bounds = array<i64: 16, 32>}]} {
    %c0_i32 = arith.constant 0 : i32
    %0 = arith.cmpi eq, %arg2, %c0_i32 : i32
    %1 = arith.extui %0 : i1 to i32
    %c0_i32_0 = arith.constant 0 : i32
    %2 = arith.cmpi ne, %1, %c0_i32_0 : i32
    scf.if %2 {
      %cst_10 = arith.constant 0.000000e+00 : f32
      %12 = vector.broadcast %cst_10 : f32 to vector<16x32xf32>
      %c0_11 = arith.constant 0 : index
      %c0_12 = arith.constant 0 : index
      %13 = vector.load %arg7[%c0_11, %c0_12] : memref<16x32xf32, #tpu.memory_space<vmem>>, vector<16x32xf32>
      tpu.vector_store %arg7[%c0_11, %c0_12], %12 {strides = array<i32>} : memref<16x32xf32, #tpu.memory_space<vmem>>, vector<16x32xf32>,
    } else {
    }
    %c0 = arith.constant 0 : index
    %c0_1 = arith.constant 0 : index
    %3 = vector.load %arg7[%c0, %c0_1] : memref<16x32xf32, #tpu.memory_space<vmem>>, vector<16x32xf32>
    %c0_2 = arith.constant 0 : index
    %c0_3 = arith.constant 0 : index
    %4 = vector.load %arg3[%c0_2, %c0_3] : memref<16x32xbf16, #tpu.memory_space<vmem>>, vector<16x32xbf16>
    %c0_4 = arith.constant 0 : index
    %c0_5 = arith.constant 0 : index
    %5 = vector.load %arg4[%c0_4, %c0_5] : memref<32x32xbf16, #tpu.memory_space<vmem>>, vector<32x32xbf16>
    %cst = arith.constant dense<0.000000e+00> : vector<16x32xf32>
    %6 = tpu.matmul %4, %5, %cst {dimension_numbers = #tpu.dot_dimension_numbers<[1], [0], [0], [1], [0, 0, 1, 1], [], []>} : vector<16x32xbf16>, vector<32x32xbf16>, vector<16x32xf32> -> vector<16x32xf32>
    %7 = arith.addf %3, %6 : vector<16x32xf32>
    %c0_6 = arith.constant 0 : index
    %c0_7 = arith.constant 0 : index
    %8 = vector.load %arg7[%c0_6, %c0_7] : memref<16x32xf32, #tpu.memory_space<vmem>>, vector<16x32xf32>
    tpu.vector_store %arg7[%c0_6, %c0_7], %7 {strides = array<i32>} : memref<16x32xf32, #tpu.memory_space<vmem>>, vector<16x32xf32>,
    %c0_i32_8 = arith.constant 0 : i32
    %9 = arith.cmpi eq, %arg2, %c0_i32_8 : i32
    %10 = arith.extui %9 : i1 to i32
    %c0_i32_9 = arith.constant 0 : i32
    %11 = arith.cmpi ne, %10, %c0_i32_9 : i32
    scf.if %11 {
      %c0_10 = arith.constant 0 : index
      %c0_11 = arith.constant 0 : index
      %12 = vector.load %arg7[%c0_10, %c0_11] : memref<16x32xf32, #tpu.memory_space<vmem>>, vector<16x32xf32>
      %c0_12 = arith.constant 0 : index
      %c0_13 = arith.constant 0 : index
      %13 = vector.load %arg5[%c0_12, %c0_13] : memref<16x32xbf16, #tpu.memory_space<vmem>>, vector<16x32xbf16>
      %14 = arith.extf %13 : vector<16x32xbf16> to vector<16x32xf32>
      %15 = arith.addf %12, %14 : vector<16x32xf32>
      %16 = arith.truncf %15 : vector<16x32xf32> to vector<16x32xbf16>
      %c0_14 = arith.constant 0 : index
      %c0_15 = arith.constant 0 : index
      %17 = vector.load %arg6[%c0_14, %c0_15] : memref<16x32xbf16, #tpu.memory_space<vmem>>, vector<16x32xbf16>
      tpu.vector_store %arg6[%c0_14, %c0_15], %16 {strides = array<i32>} : memref<16x32xbf16, #tpu.memory_space<vmem>>, vector<16x32xbf16>,
    } else {
    }
    return
  }
  func.func @transform_0(%arg0: i32, %arg1: i32, %arg2: i32) -> (i32, i32) {
    %c0_i32 = arith.constant 0 : i32
    return %arg0, %arg2 : i32, i32
  }
  func.func @transform_1(%arg0: i32, %arg1: i32, %arg2: i32) -> (i32, i32) {
    %c0_i32 = arith.constant 0 : i32
    return %arg2, %arg1 : i32, i32
  }
  func.func @transform_2(%arg0: i32, %arg1: i32, %arg2: i32) -> (i32, i32) {
    %c0_i32 = arith.constant 0 : i32
    return %arg0, %arg1 : i32, i32
  }
  func.func @transform_3(%arg0: i32, %arg1: i32, %arg2: i32) -> (i32, i32) {
    %c0_i32 = arith.constant 0 : i32
    return %arg0, %arg1 : i32, i32
  }
}

module attributes {stable_mosaic.version = 11 : i64} {
  func.func @_flash_attn_kernel(%arg0: i32, %arg1: i32, %arg2: i32, %arg3: i32, %arg4: i32, %arg5: memref<1x1x8x8xbf16, #tpu.memory_space<vmem>>, %arg6: memref<1x1x8x8xbf16, #tpu.memory_space<vmem>>, %arg7: memref<1x1x8x8xbf16, #tpu.memory_space<vmem>>, %arg8: memref<1x1x8x8xbf16, #tpu.memory_space<vmem>>, %arg9: memref<8x1xf32, #tpu.memory_space<vmem>>, %arg10: memref<8x1xf32, #tpu.memory_space<vmem>>, %arg11: memref<8x8xf32, #tpu.memory_space<vmem>>) attributes {dimension_semantics = [#tpu.dimension_semantics<parallel>, #tpu.dimension_semantics<parallel>, #tpu.dimension_semantics<parallel>, #tpu.dimension_semantics<parallel>, #tpu.dimension_semantics<arbitrary>], iteration_bounds = array<i64: 2, 2, 2, 1, 1>, scalar_prefetch = 0 : i64, scratch_operands = 3 : i64, tpu.core_type = #tpu.core_type<tc>, window_params = [{transform_indices = @transform_0, window_bounds = array<i64: 1, 1, 8, 8>}, {transform_indices = @transform_1, window_bounds = array<i64: 1, 1, 8, 8>}, {transform_indices = @transform_2, window_bounds = array<i64: 1, 1, 8, 8>}, {transform_indices = @transform_3, window_bounds = array<i64: 1, 1, 8, 8>}]} {
    %c0_i32 = arith.constant 0 : i32
    %0 = arith.cmpi eq, %arg4, %c0_i32 : i32
    %1 = arith.extui %0 : i1 to i32
    %c0_i32_0 = arith.constant 0 : i32
    %2 = arith.cmpi ne, %1, %c0_i32_0 : i32
    scf.if %2 {
      %cst = arith.constant -1.000000e+30 : f32
      %12 = vector.broadcast %cst : f32 to vector<8x1xf32>
      %c0 = arith.constant 0 : index
      %c0_5 = arith.constant 0 : index
      %13 = vector.load %arg9[%c0, %c0_5] : memref<8x1xf32, #tpu.memory_space<vmem>>, vector<8x1xf32>
      tpu.vector_store %arg9[%c0, %c0_5], %12 {strides = array<i32>} : memref<8x1xf32, #tpu.memory_space<vmem>>, vector<8x1xf32>,
      %cst_6 = arith.constant 0.000000e+00 : f32
      %14 = vector.broadcast %cst_6 : f32 to vector<8x1xf32>
      %c0_7 = arith.constant 0 : index
      %c0_8 = arith.constant 0 : index
      %15 = vector.load %arg10[%c0_7, %c0_8] : memref<8x1xf32, #tpu.memory_space<vmem>>, vector<8x1xf32>
      tpu.vector_store %arg10[%c0_7, %c0_8], %14 {strides = array<i32>} : memref<8x1xf32, #tpu.memory_space<vmem>>, vector<8x1xf32>,
      %cst_9 = arith.constant 0.000000e+00 : f32
      %16 = vector.broadcast %cst_9 : f32 to vector<8x8xf32>
      %c0_10 = arith.constant 0 : index
      %c0_11 = arith.constant 0 : index
      %17 = vector.load %arg11[%c0_10, %c0_11] : memref<8x8xf32, #tpu.memory_space<vmem>>, vector<8x8xf32>
      tpu.vector_store %arg11[%c0_10, %c0_11], %16 {strides = array<i32>} : memref<8x8xf32, #tpu.memory_space<vmem>>, vector<8x8xf32>,
    } else {
    }
    %c8_i32 = arith.constant 8 : i32
    %3 = arith.muli %arg4, %c8_i32 : i32
    %c8_i32_1 = arith.constant 8 : i32
    %4 = arith.muli %arg3, %c8_i32_1 : i32
    %c7_i32 = arith.constant 7 : i32
    %5 = arith.addi %4, %c7_i32 : i32
    %6 = arith.cmpi sle, %3, %5 : i32
    %7 = arith.extui %6 : i1 to i32
    %c0_i32_2 = arith.constant 0 : i32
    %8 = arith.cmpi ne, %7, %c0_i32_2 : i32
    scf.if %8 {
      %c0 = arith.constant 0 : index
      %c0_5 = arith.constant 0 : index
      %c0_6 = arith.constant 0 : index
      %c0_7 = arith.constant 0 : index
      %12 = vector.load %arg5[%c0, %c0_5, %c0_6, %c0_7] : memref<1x1x8x8xbf16, #tpu.memory_space<vmem>>, vector<1x1x8x8xbf16>
      %13 = vector.shape_cast %12 : vector<1x1x8x8xbf16> to vector<8x8xbf16>
      %c0_8 = arith.constant 0 : index
      %c0_9 = arith.constant 0 : index
      %c0_10 = arith.constant 0 : index
      %c0_11 = arith.constant 0 : index
      %14 = vector.load %arg6[%c0_8, %c0_9, %c0_10, %c0_11] : memref<1x1x8x8xbf16, #tpu.memory_space<vmem>>, vector<1x1x8x8xbf16>
      %15 = vector.shape_cast %14 : vector<1x1x8x8xbf16> to vector<8x8xbf16>
      %cst = arith.constant dense<0.000000e+00> : vector<8x8xf32>
      %16 = tpu.matmul %13, %15, %cst {dimension_numbers = #tpu.dot_dimension_numbers<[1], [1], [0], [0], [0, 0, 1, 0], [], []>} : vector<8x8xbf16>, vector<8x8xbf16>, vector<8x8xf32> -> vector<8x8xf32>
      %cst_12 = arith.constant 0.353553385 : f32
      %17 = vector.broadcast %cst_12 : f32 to vector<8x8xf32>
      %18 = arith.mulf %16, %17 : vector<8x8xf32>
      %c8_i32_13 = arith.constant 8 : i32
      %19 = arith.muli %arg3, %c8_i32_13 : i32
      %20 = tpu.iota {dimensions = array<i32: 0>} : vector<8x8xi32>
      %21 = vector.broadcast %19 : i32 to vector<8x8xi32>
      %22 = arith.addi %21, %20 : vector<8x8xi32>
      %c8_i32_14 = arith.constant 8 : i32
      %23 = arith.muli %arg4, %c8_i32_14 : i32
      %24 = tpu.iota {dimensions = array<i32: 1>} : vector<8x8xi32>
      %25 = vector.broadcast %23 : i32 to vector<8x8xi32>
      %26 = arith.addi %25, %24 : vector<8x8xi32>
      %27 = arith.cmpi sle, %26, %22 : vector<8x8xi32>
      %cst_15 = arith.constant -1.000000e+30 : f32
      %28 = vector.broadcast %cst_15 : f32 to vector<8x8xf32>
      %29 = arith.select %27, %18, %28 : vector<8x8xi1>, vector<8x8xf32>
      %c0_16 = arith.constant 0 : index
      %c0_17 = arith.constant 0 : index
      %30 = vector.load %arg9[%c0_16, %c0_17] : memref<8x1xf32, #tpu.memory_space<vmem>>, vector<8x1xf32>
      %cst_18 = arith.constant dense<0xFF800000> : vector<8xf32>
      %31 = vector.multi_reduction <maximumf>, %29, %cst_18 [1] : vector<8x8xf32> to vector<8xf32>
      %32 = vector.shape_cast %31 : vector<8xf32> to vector<8x1xf32>
      %33 = arith.maximumf %30, %32 : vector<8x1xf32>
      %34 = arith.subf %30, %33 : vector<8x1xf32>
      %35 = math.exp %34 : vector<8x1xf32>
      %36 = vector.broadcast %33 : vector<8x1xf32> to vector<8x8xf32>
      %37 = arith.subf %29, %36 : vector<8x8xf32>
      %38 = math.exp %37 : vector<8x8xf32>
      %c0_19 = arith.constant 0 : index
      %c0_20 = arith.constant 0 : index
      %39 = vector.load %arg10[%c0_19, %c0_20] : memref<8x1xf32, #tpu.memory_space<vmem>>, vector<8x1xf32>
      %40 = arith.mulf %35, %39 : vector<8x1xf32>
      %cst_21 = arith.constant dense<0.000000e+00> : vector<8xf32>
      %41 = vector.multi_reduction <add>, %38, %cst_21 [1] : vector<8x8xf32> to vector<8xf32>
      %42 = vector.shape_cast %41 : vector<8xf32> to vector<8x1xf32>
      %43 = arith.addf %40, %42 : vector<8x1xf32>
      %c0_22 = arith.constant 0 : index
      %c0_23 = arith.constant 0 : index
      %44 = vector.load %arg10[%c0_22, %c0_23] : memref<8x1xf32, #tpu.memory_space<vmem>>, vector<8x1xf32>
      tpu.vector_store %arg10[%c0_22, %c0_23], %43 {strides = array<i32>} : memref<8x1xf32, #tpu.memory_space<vmem>>, vector<8x1xf32>,
      %c0_24 = arith.constant 0 : index
      %c0_25 = arith.constant 0 : index
      %45 = vector.load %arg11[%c0_24, %c0_25] : memref<8x8xf32, #tpu.memory_space<vmem>>, vector<8x8xf32>
      %46 = vector.broadcast %35 : vector<8x1xf32> to vector<8x8xf32>
      %47 = arith.mulf %46, %45 : vector<8x8xf32>
      %48 = arith.truncf %38 : vector<8x8xf32> to vector<8x8xbf16>
      %c0_26 = arith.constant 0 : index
      %c0_27 = arith.constant 0 : index
      %c0_28 = arith.constant 0 : index
      %c0_29 = arith.constant 0 : index
      %49 = vector.load %arg7[%c0_26, %c0_27, %c0_28, %c0_29] : memref<1x1x8x8xbf16, #tpu.memory_space<vmem>>, vector<1x1x8x8xbf16>
      %50 = vector.shape_cast %49 : vector<1x1x8x8xbf16> to vector<8x8xbf16>
      %cst_30 = arith.constant dense<0.000000e+00> : vector<8x8xf32>
      %51 = tpu.matmul %48, %50, %cst_30 {dimension_numbers = #tpu.dot_dimension_numbers<[1], [0], [0], [1], [0, 0, 1, 1], [], []>} : vector<8x8xbf16>, vector<8x8xbf16>, vector<8x8xf32> -> vector<8x8xf32>
      %52 = arith.addf %47, %51 : vector<8x8xf32>
      %c0_31 = arith.constant 0 : index
      %c0_32 = arith.constant 0 : index
      %53 = vector.load %arg11[%c0_31, %c0_32] : memref<8x8xf32, #tpu.memory_space<vmem>>, vector<8x8xf32>
      tpu.vector_store %arg11[%c0_31, %c0_32], %52 {strides = array<i32>} : memref<8x8xf32, #tpu.memory_space<vmem>>, vector<8x8xf32>,
      %c0_33 = arith.constant 0 : index
      %c0_34 = arith.constant 0 : index
      %54 = vector.load %arg9[%c0_33, %c0_34] : memref<8x1xf32, #tpu.memory_space<vmem>>, vector<8x1xf32>
      tpu.vector_store %arg9[%c0_33, %c0_34], %33 {strides = array<i32>} : memref<8x1xf32, #tpu.memory_space<vmem>>, vector<8x1xf32>,
    } else {
    }
    %c0_i32_3 = arith.constant 0 : i32
    %9 = arith.cmpi eq, %arg4, %c0_i32_3 : i32
    %10 = arith.extui %9 : i1 to i32
    %c0_i32_4 = arith.constant 0 : i32
    %11 = arith.cmpi ne, %10, %c0_i32_4 : i32
    scf.if %11 {
      %c0 = arith.constant 0 : index
      %c0_5 = arith.constant 0 : index
      %12 = vector.load %arg11[%c0, %c0_5] : memref<8x8xf32, #tpu.memory_space<vmem>>, vector<8x8xf32>
      %c0_6 = arith.constant 0 : index
      %c0_7 = arith.constant 0 : index
      %13 = vector.load %arg10[%c0_6, %c0_7] : memref<8x1xf32, #tpu.memory_space<vmem>>, vector<8x1xf32>
      %14 = tpu.reciprocal %13 {approx = true} : vector<8x1xf32> -> vector<8x1xf32>
      %15 = vector.broadcast %14 : vector<8x1xf32> to vector<8x8xf32>
      %16 = arith.mulf %12, %15 : vector<8x8xf32>
      %17 = arith.truncf %16 : vector<8x8xf32> to vector<8x8xbf16>
      %c0_8 = arith.constant 0 : index
      %c0_9 = arith.constant 0 : index
      %c0_10 = arith.constant 0 : index
      %c0_11 = arith.constant 0 : index
      %18 = vector.load %arg8[%c0_8, %c0_9, %c0_10, %c0_11] : memref<1x1x8x8xbf16, #tpu.memory_space<vmem>>, vector<1x1x8x8xbf16>
      %19 = vector.shape_cast %18 : vector<1x1x8x8xbf16> to vector<8x8xbf16>
      %20 = vector.shape_cast %17 : vector<8x8xbf16> to vector<1x1x8x8xbf16>
      tpu.vector_store %arg8[%c0_8, %c0_9, %c0_10, %c0_11], %20 {strides = array<i32>} : memref<1x1x8x8xbf16, #tpu.memory_space<vmem>>, vector<1x1x8x8xbf16>,
    } else {
    }
    return
  }
  func.func @transform_0(%arg0: i32, %arg1: i32, %arg2: i32, %arg3: i32, %arg4: i32) -> (i32, i32, i32, i32) {
    %c2_i32 = arith.constant 2 : i32
    %0 = arith.muli %arg1, %c2_i32 : i32
    %1 = arith.addi %0, %arg2 : i32
    %c0_i32 = arith.constant 0 : i32
    %c0_i32_0 = arith.constant 0 : i32
    return %arg0, %1, %arg3, %c0_i32 : i32, i32, i32, i32
  }
  func.func @transform_1(%arg0: i32, %arg1: i32, %arg2: i32, %arg3: i32, %arg4: i32) -> (i32, i32, i32, i32) {
    %c0_i32 = arith.constant 0 : i32
    %c0_i32_0 = arith.constant 0 : i32
    return %arg0, %arg1, %arg4, %c0_i32 : i32, i32, i32, i32
  }
  func.func @transform_2(%arg0: i32, %arg1: i32, %arg2: i32, %arg3: i32, %arg4: i32) -> (i32, i32, i32, i32) {
    %c0_i32 = arith.constant 0 : i32
    %c0_i32_0 = arith.constant 0 : i32
    return %arg0, %arg1, %arg4, %c0_i32 : i32, i32, i32, i32
  }
  func.func @transform_3(%arg0: i32, %arg1: i32, %arg2: i32, %arg3: i32, %arg4: i32) -> (i32, i32, i32, i32) {
    %c2_i32 = arith.constant 2 : i32
    %0 = arith.muli %arg1, %c2_i32 : i32
    %1 = arith.addi %0, %arg2 : i32
    %c0_i32 = arith.constant 0 : i32
    %c0_i32_0 = arith.constant 0 : i32
    return %arg0, %1, %arg3, %c0_i32 : i32, i32, i32, i32
  }
}

module attributes {stable_mosaic.version = 11 : i64} {
  func.func @_mlp_kernel(%arg0: i32, %arg1: i32, %arg2: memref<16x32xbf16, #tpu.memory_space<vmem>>, %arg3: memref<32x64xbf16, #tpu.memory_space<vmem>>, %arg4: memref<32x64xbf16, #tpu.memory_space<vmem>>, %arg5: memref<64x32xbf16, #tpu.memory_space<vmem>>, %arg6: memref<16x32xbf16, #tpu.memory_space<vmem>>, %arg7: memref<16x32xbf16, #tpu.memory_space<vmem>>, %arg8: memref<16x32xf32, #tpu.memory_space<vmem>>) attributes {dimension_semantics = [#tpu.dimension_semantics<parallel>, #tpu.dimension_semantics<arbitrary>], iteration_bounds = array<i64: 1, 1>, scalar_prefetch = 0 : i64, scratch_operands = 1 : i64, tpu.core_type = #tpu.core_type<tc>, window_params = [{transform_indices = @transform_0, window_bounds = array<i64: 16, 32>}, {transform_indices = @transform_1, window_bounds = array<i64: 32, 64>}, {transform_indices = @transform_2, window_bounds = array<i64: 32, 64>}, {transform_indices = @transform_3, window_bounds = array<i64: 64, 32>}, {transform_indices = @transform_4, window_bounds = array<i64: 16, 32>}, {transform_indices = @transform_5, window_bounds = array<i64: 16, 32>}]} {
    %c0_i32 = arith.constant 0 : i32
    %0 = arith.cmpi eq, %arg1, %c0_i32 : i32
    %1 = arith.extui %0 : i1 to i32
    %c0_i32_0 = arith.constant 0 : i32
    %2 = arith.cmpi ne, %1, %c0_i32_0 : i32
    scf.if %2 {
      %cst_17 = arith.constant 0.000000e+00 : f32
      %24 = vector.broadcast %cst_17 : f32 to vector<16x32xf32>
      %c0_18 = arith.constant 0 : index
      %c0_19 = arith.constant 0 : index
      %25 = vector.load %arg8[%c0_18, %c0_19] : memref<16x32xf32, #tpu.memory_space<vmem>>, vector<16x32xf32>
      tpu.vector_store %arg8[%c0_18, %c0_19], %24 {strides = array<i32>} : memref<16x32xf32, #tpu.memory_space<vmem>>, vector<16x32xf32>,
    } else {
    }
    %c0 = arith.constant 0 : index
    %c0_1 = arith.constant 0 : index
    %3 = vector.load %arg2[%c0, %c0_1] : memref<16x32xbf16, #tpu.memory_space<vmem>>, vector<16x32xbf16>
    %c0_2 = arith.constant 0 : index
    %c0_3 = arith.constant 0 : index
    %4 = vector.load %arg3[%c0_2, %c0_3] : memref<32x64xbf16, #tpu.memory_space<vmem>>, vector<32x64xbf16>
    %cst = arith.constant dense<0.000000e+00> : vector<16x64xf32>
    %5 = tpu.matmul %3, %4, %cst {dimension_numbers = #tpu.dot_dimension_numbers<[1], [0], [0], [1], [0, 0, 1, 1], [], []>} : vector<16x32xbf16>, vector<32x64xbf16>, vector<16x64xf32> -> vector<16x64xf32>
    %c0_4 = arith.constant 0 : index
    %c0_5 = arith.constant 0 : index
    %6 = vector.load %arg4[%c0_4, %c0_5] : memref<32x64xbf16, #tpu.memory_space<vmem>>, vector<32x64xbf16>
    %cst_6 = arith.constant dense<0.000000e+00> : vector<16x64xf32>
    %7 = tpu.matmul %3, %6, %cst_6 {dimension_numbers = #tpu.dot_dimension_numbers<[1], [0], [0], [1], [0, 0, 1, 1], [], []>} : vector<16x32xbf16>, vector<32x64xbf16>, vector<16x64xf32> -> vector<16x64xf32>
    %8 = arith.negf %5 : vector<16x64xf32>
    %9 = math.exp %8 : vector<16x64xf32>
    %cst_7 = arith.constant 1.000000e+00 : f32
    %10 = vector.broadcast %cst_7 : f32 to vector<16x64xf32>
    %11 = arith.addf %10, %9 : vector<16x64xf32>
    %12 = arith.divf %10, %11 : vector<16x64xf32>
    %13 = arith.mulf %5, %12 : vector<16x64xf32>
    %14 = arith.mulf %13, %7 : vector<16x64xf32>
    %c0_8 = arith.constant 0 : index
    %c0_9 = arith.constant 0 : index
    %15 = vector.load %arg8[%c0_8, %c0_9] : memref<16x32xf32, #tpu.memory_space<vmem>>, vector<16x32xf32>
    %16 = arith.truncf %14 : vector<16x64xf32> to vector<16x64xbf16>
    %c0_10 = arith.constant 0 : index
    %c0_11 = arith.constant 0 : index
    %17 = vector.load %arg5[%c0_10, %c0_11] : memref<64x32xbf16, #tpu.memory_space<vmem>>, vector<64x32xbf16>
    %cst_12 = arith.constant dense<0.000000e+00> : vector<16x32xf32>
    %18 = tpu.matmul %16, %17, %cst_12 {dimension_numbers = #tpu.dot_dimension_numbers<[1], [0], [0], [1], [0, 0, 1, 1], [], []>} : vector<16x64xbf16>, vector<64x32xbf16>, vector<16x32xf32> -> vector<16x32xf32>
    %19 = arith.addf %15, %18 : vector<16x32xf32>
    %c0_13 = arith.constant 0 : index
    %c0_14 = arith.constant 0 : index
    %20 = vector.load %arg8[%c0_13, %c0_14] : memref<16x32xf32, #tpu.memory_space<vmem>>, vector<16x32xf32>
    tpu.vector_store %arg8[%c0_13, %c0_14], %19 {strides = array<i32>} : memref<16x32xf32, #tpu.memory_space<vmem>>, vector<16x32xf32>,
    %c0_i32_15 = arith.constant 0 : i32
    %21 = arith.cmpi eq, %arg1, %c0_i32_15 : i32
    %22 = arith.extui %21 : i1 to i32
    %c0_i32_16 = arith.constant 0 : i32
    %23 = arith.cmpi ne, %22, %c0_i32_16 : i32
    scf.if %23 {
      %c0_17 = arith.constant 0 : index
      %c0_18 = arith.constant 0 : index
      %24 = vector.load %arg8[%c0_17, %c0_18] : memref<16x32xf32, #tpu.memory_space<vmem>>, vector<16x32xf32>
      %c0_19 = arith.constant 0 : index
      %c0_20 = arith.constant 0 : index
      %25 = vector.load %arg6[%c0_19, %c0_20] : memref<16x32xbf16, #tpu.memory_space<vmem>>, vector<16x32xbf16>
      %26 = arith.extf %25 : vector<16x32xbf16> to vector<16x32xf32>
      %27 = arith.addf %24, %26 : vector<16x32xf32>
      %28 = arith.truncf %27 : vector<16x32xf32> to vector<16x32xbf16>
      %c0_21 = arith.constant 0 : index
      %c0_22 = arith.constant 0 : index
      %29 = vector.load %arg7[%c0_21, %c0_22] : memref<16x32xbf16, #tpu.memory_space<vmem>>, vector<16x32xbf16>
      tpu.vector_store %arg7[%c0_21, %c0_22], %28 {strides = array<i32>} : memref<16x32xbf16, #tpu.memory_space<vmem>>, vector<16x32xbf16>,
    } else {
    }
    return
  }
  func.func @transform_0(%arg0: i32, %arg1: i32) -> (i32, i32) {
    %c0_i32 = arith.constant 0 : i32
    %c0_i32_0 = arith.constant 0 : i32
    return %arg0, %c0_i32 : i32, i32
  }
  func.func @transform_1(%arg0: i32, %arg1: i32) -> (i32, i32) {
    %c0_i32 = arith.constant 0 : i32
    %c0_i32_0 = arith.constant 0 : i32
    return %c0_i32, %arg1 : i32, i32
  }
  func.func @transform_2(%arg0: i32, %arg1: i32) -> (i32, i32) {
    %c0_i32 = arith.constant 0 : i32
    %c0_i32_0 = arith.constant 0 : i32
    return %c0_i32, %arg1 : i32, i32
  }
  func.func @transform_3(%arg0: i32, %arg1: i32) -> (i32, i32) {
    %c0_i32 = arith.constant 0 : i32
    %c0_i32_0 = arith.constant 0 : i32
    return %arg1, %c0_i32 : i32, i32
  }
  func.func @transform_4(%arg0: i32, %arg1: i32) -> (i32, i32) {
    %c0_i32 = arith.constant 0 : i32
    %c0_i32_0 = arith.constant 0 : i32
    return %arg0, %c0_i32 : i32, i32
  }
  func.func @transform_5(%arg0: i32, %arg1: i32) -> (i32, i32) {
    %c0_i32 = arith.constant 0 : i32
    %c0_i32_0 = arith.constant 0 : i32
    return %arg0, %c0_i32 : i32, i32
  }
}

module attributes {stable_mosaic.version = 11 : i64} {
  func.func @_matmul_kernel(%arg0: i32, %arg1: i32, %arg2: i32, %arg3: memref<16x32xbf16, #tpu.memory_space<vmem>>, %arg4: memref<32x128xbf16, #tpu.memory_space<vmem>>, %arg5: memref<16x128xf32, #tpu.memory_space<vmem>>, %arg6: memref<16x128xf32, #tpu.memory_space<vmem>>) attributes {dimension_semantics = [#tpu.dimension_semantics<parallel>, #tpu.dimension_semantics<parallel>, #tpu.dimension_semantics<arbitrary>], iteration_bounds = array<i64: 1, 1, 1>, scalar_prefetch = 0 : i64, scratch_operands = 1 : i64, tpu.core_type = #tpu.core_type<tc>, window_params = [{transform_indices = @transform_0, window_bounds = array<i64: 16, 32>}, {transform_indices = @transform_1, window_bounds = array<i64: 32, 128>}, {transform_indices = @transform_2, window_bounds = array<i64: 16, 128>}]} {
    %c0_i32 = arith.constant 0 : i32
    %0 = arith.cmpi eq, %arg2, %c0_i32 : i32
    %1 = arith.extui %0 : i1 to i32
    %c0_i32_0 = arith.constant 0 : i32
    %2 = arith.cmpi ne, %1, %c0_i32_0 : i32
    scf.if %2 {
      %cst_10 = arith.constant 0.000000e+00 : f32
      %12 = vector.broadcast %cst_10 : f32 to vector<16x128xf32>
      %c0_11 = arith.constant 0 : index
      %c0_12 = arith.constant 0 : index
      %13 = vector.load %arg6[%c0_11, %c0_12] : memref<16x128xf32, #tpu.memory_space<vmem>>, vector<16x128xf32>
      tpu.vector_store %arg6[%c0_11, %c0_12], %12 {strides = array<i32>} : memref<16x128xf32, #tpu.memory_space<vmem>>, vector<16x128xf32>,
    } else {
    }
    %c0 = arith.constant 0 : index
    %c0_1 = arith.constant 0 : index
    %3 = vector.load %arg6[%c0, %c0_1] : memref<16x128xf32, #tpu.memory_space<vmem>>, vector<16x128xf32>
    %c0_2 = arith.constant 0 : index
    %c0_3 = arith.constant 0 : index
    %4 = vector.load %arg3[%c0_2, %c0_3] : memref<16x32xbf16, #tpu.memory_space<vmem>>, vector<16x32xbf16>
    %c0_4 = arith.constant 0 : index
    %c0_5 = arith.constant 0 : index
    %5 = vector.load %arg4[%c0_4, %c0_5] : memref<32x128xbf16, #tpu.memory_space<vmem>>, vector<32x128xbf16>
    %cst = arith.constant dense<0.000000e+00> : vector<16x128xf32>
    %6 = tpu.matmul %4, %5, %cst {dimension_numbers = #tpu.dot_dimension_numbers<[1], [0], [0], [1], [0, 0, 1, 1], [], []>} : vector<16x32xbf16>, vector<32x128xbf16>, vector<16x128xf32> -> vector<16x128xf32>
    %7 = arith.addf %3, %6 : vector<16x128xf32>
    %c0_6 = arith.constant 0 : index
    %c0_7 = arith.constant 0 : index
    %8 = vector.load %arg6[%c0_6, %c0_7] : memref<16x128xf32, #tpu.memory_space<vmem>>, vector<16x128xf32>
    tpu.vector_store %arg6[%c0_6, %c0_7], %7 {strides = array<i32>} : memref<16x128xf32, #tpu.memory_space<vmem>>, vector<16x128xf32>,
    %c0_i32_8 = arith.constant 0 : i32
    %9 = arith.cmpi eq, %arg2, %c0_i32_8 : i32
    %10 = arith.extui %9 : i1 to i32
    %c0_i32_9 = arith.constant 0 : i32
    %11 = arith.cmpi ne, %10, %c0_i32_9 : i32
    scf.if %11 {
      %c0_10 = arith.constant 0 : index
      %c0_11 = arith.constant 0 : index
      %12 = vector.load %arg6[%c0_10, %c0_11] : memref<16x128xf32, #tpu.memory_space<vmem>>, vector<16x128xf32>
      %c0_12 = arith.constant 0 : index
      %c0_13 = arith.constant 0 : index
      %13 = vector.load %arg5[%c0_12, %c0_13] : memref<16x128xf32, #tpu.memory_space<vmem>>, vector<16x128xf32>
      tpu.vector_store %arg5[%c0_12, %c0_13], %12 {strides = array<i32>} : memref<16x128xf32, #tpu.memory_space<vmem>>, vector<16x128xf32>,
    } else {
    }
    return
  }
  func.func @transform_0(%arg0: i32, %arg1: i32, %arg2: i32) -> (i32, i32) {
    %c0_i32 = arith.constant 0 : i32
    return %arg0, %arg2 : i32, i32
  }
  func.func @transform_1(%arg0: i32, %arg1: i32, %arg2: i32) -> (i32, i32) {
    %c0_i32 = arith.constant 0 : i32
    return %arg2, %arg1 : i32, i32
  }
  func.func @transform_2(%arg0: i32, %arg1: i32, %arg2: i32) -> (i32, i32) {
    %c0_i32 = arith.constant 0 : i32
    return %arg0, %arg1 : i32, i32
  }
}

</mosaic_0001>

<bundles_post_ra>
// kernel: llama_forward.21
= control target key start
LH: loop header
LB: loop body
LE: loop exit
PB: predicated region body
PF: predicated region fallthrough
CT: control target
= control target key end

     0   :  { %s544_s15 = smov 0   ;;  %s546_s16 = smov 0   ;;  %s586_s0 = inlined_call_operand.vmem [shape: bf16[4,8,8], index: 0, kind: input, shape index: {}]   ;;  %s587_s1 = inlined_call_operand.vmem [shape: f32[8,8], index: 1, kind: input, shape index: {}]   ;;  %s588_s2 = inlined_call_operand.vmem [shape: f32[8,8], index: 2, kind: input, shape index: {}]   ;;  %s589_s3 = inlined_call_operand.vmem [shape: f32[8,8], index: 3, kind: input, shape index: {}]   ;;  %s590_s4 = inlined_call_operand.vmem [shape: bf16[4,8,8], index: 4, kind: output, shape index: {}]  }
   0x1   :  { %s548_s17 = smov 0  }
   0x2 LB: > { %s26_s18 = sadd.s32 1, %s511_s16  ;;  %p454_p0 = scmp.ge.s32.totalorder %s515_s17, 1  ;;  %s515_s17 = sphi %s548_s17, %s14_s17   ;;  %s511_s16 = sphi %s546_s16, %s592_s16   ;;  %s507_s15 = sphi %s544_s15, %s591_s15  }
   0x3   : > { %p28_p1 = scmp.ge.s32.totalorder %s26_s18, 4  ;;  %p198_p2 = scmp.lt.s32.totalorder %s515_s17, 5 }
   0x5   : > { %s594_s18 = smov (%p28_p1, %s26_s18), 0  ;;  %p199_p3 = pnand %p454_p0, %p198_p2 }
   0x6   : > { %p236_p4 = scmp.lt.s32.totalorder (!%p199_p3), %s507_s15, 3 }
   0x7   : > { %202 = sbr.rel (%p199_p3) target bundleno = 218 (0xda), region = 36 }
   0xc   : > { %v260_v0 = vld [vmem:[%s589_s3] sm:$0xff]  ;;  %v517_v1 = vmov 0.0   ;;  %vm518_vm0 = vmmov 0   ;;  %s596_s15 = smov (!%p236_p4, %s507_s15), 3  ;;  %vm261_vm1 = vcmask 64512   ;;  %vm341_vm2 = vcmask 60416  }
   0xd   : > { %462 = vmatprep.subr.mxu0 %v517_v1  ;;  %464 = vmatprep.mubr.msk.f32.mxu0 %vm518_vm0, %v517_v1  ;;  %s455_s21 = sshll.u32 %s596_s15, 2  ;;  %v335_v4 = vld [vmem:[%s587_s1] sm:$0xff] }
   0xe   : > { %463 = vmatpush3.msra.mxu0 %v260_v0  ;;  %s242_s24 = scalar_lea.vmem %s586_s0, %s455_s21  ;;  %v337_v5 = vld [vmem:[%s588_s2] sm:$0xff]  ;;  %s257_s5 = scalar_lea.vmem %s590_s4, %s455_s21 }
   0xf   : > { %v258_v2 = vld [vmem:[%s242_s24] sm:$0xf] }
  0x10   : > { %v259_v3 = vunpack.c.l.bf16 %v258_v2 }
  0x12   : > { %465 = vmatmul.mubr.msk.f32.vlgmr.msra.gmra.mxu0 %vm261_vm1, %v259_v3  ;;  %v336_v6 = vmul.f32 %v335_v4, %v259_v3 }
  0xd2   : > { %v331_v7 = vpop.f32.mrf.mxu0 }
  0xd3   : > { %v338_v8 = vmul.f32 %v337_v5, %v331_v7 }
  0xd4   : > { %v466_v9 = vpop.f32.mrf.mxu0 }
  0xd5   : > { %v339_v10 = vadd.f32 %v338_v8, %v336_v6 }
  0xd7   : > { %v340_v11 = vpack.c.bf16 %v339_v10, %v339_v10 }
  0xd9   : > { %342 = vst.msk [vmem:[%s257_s5] sm:$0xf] %vm341_vm2, %v340_v11 }
  0xda PF: > { %s14_s17 = sadd.s32 1, %s515_s17   ;;  %s591_s15 = smov %s511_s16 }
  0xdb   : > { %p11_p5 = scmp.ge.s32.totalorder %s14_s17, 6   ;;  %s592_s16 = smov %s594_s18 }
  0xdd   :  { %13 = sbr.rel (!%p11_p5) target bundleno = 2 (0x2), region = 72 }

// kernel: llama_forward.20
= control target key start
LH: loop header
LB: loop body
LE: loop exit
PB: predicated region body
PF: predicated region fallthrough
CT: control target
= control target key end

     0   :  { %s544_s15 = smov 0   ;;  %s546_s16 = smov 0   ;;  %s586_s0 = inlined_call_operand.vmem [shape: bf16[8,8,8], index: 0, kind: input, shape index: {}]   ;;  %s587_s1 = inlined_call_operand.vmem [shape: f32[8,8], index: 1, kind: input, shape index: {}]   ;;  %s588_s2 = inlined_call_operand.vmem [shape: f32[8,8], index: 2, kind: input, shape index: {}]   ;;  %s589_s3 = inlined_call_operand.vmem [shape: f32[8,8], index: 3, kind: input, shape index: {}]   ;;  %s590_s4 = inlined_call_operand.vmem [shape: bf16[8,8,8], index: 4, kind: output, shape index: {}]  }
   0x1   :  { %s548_s17 = smov 0  }
   0x2 LB: > { %s26_s18 = sadd.s32 1, %s511_s16  ;;  %p454_p0 = scmp.ge.s32.totalorder %s515_s17, 1  ;;  %s515_s17 = sphi %s548_s17, %s14_s17   ;;  %s511_s16 = sphi %s546_s16, %s592_s16   ;;  %s507_s15 = sphi %s544_s15, %s591_s15  }
   0x3   : > { %p28_p1 = scmp.ge.s32.totalorder %s26_s18, 8  ;;  %p198_p2 = scmp.lt.s32.totalorder %s515_s17, 9 }
   0x5   : > { %s594_s18 = smov (%p28_p1, %s26_s18), 0  ;;  %p199_p3 = pnand %p454_p0, %p198_p2 }
   0x6   : > { %p236_p4 = scmp.lt.s32.totalorder (!%p199_p3), %s507_s15, 7 }
   0x7   : > { %202 = sbr.rel (%p199_p3) target bundleno = 218 (0xda), region = 36 }
   0xc   : > { %v260_v0 = vld [vmem:[%s589_s3] sm:$0xff]  ;;  %v517_v1 = vmov 0.0   ;;  %vm518_vm0 = vmmov 0   ;;  %s596_s15 = smov (!%p236_p4, %s507_s15), 7  ;;  %vm261_vm1 = vcmask 64512   ;;  %vm341_vm2 = vcmask 60416  }
   0xd   : > { %462 = vmatprep.subr.mxu0 %v517_v1  ;;  %464 = vmatprep.mubr.msk.f32.mxu0 %vm518_vm0, %v517_v1  ;;  %s455_s21 = sshll.u32 %s596_s15, 2  ;;  %v335_v4 = vld [vmem:[%s587_s1] sm:$0xff] }
   0xe   : > { %463 = vmatpush3.msra.mxu0 %v260_v0  ;;  %s242_s24 = scalar_lea.vmem %s586_s0, %s455_s21  ;;  %v337_v5 = vld [vmem:[%s588_s2] sm:$0xff]  ;;  %s257_s5 = scalar_lea.vmem %s590_s4, %s455_s21 }
   0xf   : > { %v258_v2 = vld [vmem:[%s242_s24] sm:$0xf] }
  0x10   : > { %v259_v3 = vunpack.c.l.bf16 %v258_v2 }
  0x12   : > { %465 = vmatmul.mubr.msk.f32.vlgmr.msra.gmra.mxu0 %vm261_vm1, %v259_v3  ;;  %v336_v6 = vmul.f32 %v335_v4, %v259_v3 }
  0xd2   : > { %v331_v7 = vpop.f32.mrf.mxu0 }
  0xd3   : > { %v338_v8 = vmul.f32 %v337_v5, %v331_v7 }
  0xd4   : > { %v466_v9 = vpop.f32.mrf.mxu0 }
  0xd5   : > { %v339_v10 = vadd.f32 %v338_v8, %v336_v6 }
  0xd7   : > { %v340_v11 = vpack.c.bf16 %v339_v10, %v339_v10 }
  0xd9   : > { %342 = vst.msk [vmem:[%s257_s5] sm:$0xf] %vm341_vm2, %v340_v11 }
  0xda PF: > { %s14_s17 = sadd.s32 1, %s515_s17   ;;  %s591_s15 = smov %s511_s16 }
  0xdb   : > { %p11_p5 = scmp.ge.s32.totalorder %s14_s17, 10   ;;  %s592_s16 = smov %s594_s18 }
  0xdd   :  { %13 = sbr.rel (!%p11_p5) target bundleno = 2 (0x2), region = 72 }

// kernel: llama_forward.19
= control target key start
LH: loop header
LB: loop body
LE: loop exit
PB: predicated region body
PF: predicated region fallthrough
CT: control target
= control target key end

     0   :  { %vm16_vm0 = vcmask 523264   ;;  %v138_v0 = vmov 0.0   ;;  %vm139_vm1 = vmmov 0   ;;  %vm44_vm2 = vcmask 261120   ;;  %s174_s1 = inlined_call_operand.vmem [shape: bf16[32,64], index: 1, kind: input, shape index: {}]   ;;  %s175_s0 = inlined_call_operand.vmem [shape: bf16[16,32], index: 0, kind: input, shape index: {}]   ;;  %s176_s2 = inlined_call_operand.vmem [shape: bf16[16,64], index: 2, kind: output, shape index: {}]  }
   0x1   :  { %125 = vmatprep.subr.bf16.mxu0 %v138_v0  ;;  %v135_v1 = vld [vmem:[%s174_s1 + $0x8] sm:$0xff]   ;;  %129 = vmatprep.mubr.msk.bf16.mxu0 %vm139_vm1, %v138_v0  ;;  %17 = vst.msk [vmem:[#allocation2] sm:$0xff] %vm16_vm0, %v138_v0  ;;  %18 = vst.msk [vmem:[#allocation2 + $0x8] sm:$0xff] %vm16_vm0, %v138_v0  ;;  %v136_v2 = vld [vmem:[%s174_s1] sm:$0xff]   ;;  %vm107_vm3 = vcmask 519168  }
   0x2   :  { %126 = vmatpush3.bf16.msra.mxu0 %v135_v1  ;;  %v137_v3 = vld [vmem:[%s175_s0] sm:$0xff]  }
   0x3   :  { %127 = vmatprep.subr.bf16.mxu0 %v138_v0 }
   0x6   :  { %128 = vmatpush3.bf16.msra.mxu0 %v136_v2 }
   0x8   :  { %v19_v4 = vld [vmem:[#allocation2] sm:$0xff]  ;;  %v20_v8 = vld [vmem:[#allocation2 + $0x8] sm:$0xff] }
   0x9   :  { %130 = vmatmul.mubr.msk.bf16.vlgmr.msra.gmra.mxu0 %vm44_vm2, %v137_v3 }
  0xc9   :  { %v82_v5 = vpop.f32.mrf.mxu0 }
  0xca   :  { %v89_v6 = vadd.f32 %v82_v5, %v19_v4 }
  0xcb   :  { %v131_v7 = vpop.f32.mrf.mxu0 }
  0xcc   :  { %92 = vst.msk [vmem:[#allocation2] sm:$0xff] %vm16_vm0, %v89_v6 }
  0xcd   :  { %v85_v9 = vpop.f32.mrf.mxu0 }
  0xce   :  { %v90_v10 = vadd.f32 %v85_v9, %v20_v8 }
  0xcf   :  { %v132_v11 = vpop.f32.mrf.mxu0 }
  0xd0   :  { %93 = vst.msk [vmem:[#allocation2 + $0x8] sm:$0xff] %vm16_vm0, %v90_v10 }
  0xd3   :  { %v97_v12 = vld [vmem:[#allocation2] sm:$0xff] }
  0xd4   :  { %v120_v13 = vpack.c.bf16 %v97_v12, %v97_v12 }
  0xd6   :  { %108 = vst.msk [vmem:[%s176_s2] sm:$0xf] %vm107_vm3, %v120_v13 }
  0xd7   :  { %v98_v14 = vld [vmem:[#allocation2 + $0x8] sm:$0xff] }
  0xd8   :  { %v121_v15 = vpack.c.bf16 %v98_v14, %v98_v14 }
  0xda   :  { %109 = vst.msk [vmem:[%s176_s2 + $0x4] sm:$0xf] %vm107_vm3, %v121_v15 }

// kernel: llama_forward.18
= control target key start
LH: loop header
LB: loop body
LE: loop exit
PB: predicated region body
PF: predicated region fallthrough
CT: control target
= control target key end

     0   :  { %vm17_vm0 = vcmask 261120   ;;  %vm50_vm1 = vcmask 257024   ;;  %s97_s0 = inlined_call_operand.vmem [shape: bf16[16,32], index: 0, kind: input, shape index: {}]   ;;  %s98_s1 = inlined_call_operand.vmem [shape: f32[1,32], index: 1, kind: input, shape index: {}]   ;;  %s99_s2 = inlined_call_operand.vmem [shape: bf16[16,32], index: 2, kind: output, shape index: {}]  }
   0x1   :  { %v63_v0 = vld [vmem:[%s97_s0] sm:$0xff]  }
   0x2   :  { %v64_v1 = vunpack.c.l.bf16 %v63_v0  ;;  %v65_v2 = vunpack.c.h.bf16 %v63_v0  ;;  %v57_v14 = vld [vmem:[%s98_s1] ss:$0 sm:$0xff] }
   0x4   :  { %v15_v3 = vmul.f32 %v64_v1, %v64_v1  ;;  %v16_v4 = vmul.f32 %v65_v2, %v65_v2 }
   0x6   :  { %v18_v5 = vsel %vm17_vm0, %v15_v3, 0.0  ;;  %v21_v6 = vsel %vm17_vm0, %v16_v4, 0.0 }
   0x7   :  { %19 = vadd.xlane.f32.xlu0 %v18_v5 }
   0xb   :  { %22 = vadd.xlane.f32.xlu0 %v21_v6 }
  0x90   :  { %v20_v7 = vpop.xlane.xlu0 %19 }
  0x91   :  { %v25_v8 = vmul.f32 0.03125, %v20_v7 }
  0x93   :  { %v27_v9 = vadd.f32 1e-05, %v25_v8 }
  0x94   :  { %v23_v10 = vpop.xlane.xlu0 %22 }
  0x95   :  { %66 = vrsqrt.f32 %v27_v9  ;;  %v26_v11 = vmul.f32 0.03125, %v23_v10 }
  0x97   :  { %v28_v12 = vadd.f32 1e-05, %v26_v11 }
  0x99   :  { %68 = vrsqrt.f32 %v28_v12 }
  0xa2   :  { %v67_v13 = vpop.eup %66 }
  0xa3   :  { %v31_v15 = vmul.f32 %v67_v13, %v64_v1 }
  0xa5   :  { %v40_v16 = vmul.f32 %v57_v14, %v31_v15 }
  0xa6   :  { %v69_v17 = vpop.eup %68 }
  0xa7   :  { %v60_v18 = vpack.c.bf16 %v40_v16, %v40_v16  ;;  %v32_v19 = vmul.f32 %v69_v17, %v65_v2 }
  0xa9   :  { %51 = vst.msk [vmem:[%s99_s2] sm:$0xf] %vm50_vm1, %v60_v18  ;;  %v41_v20 = vmul.f32 %v57_v14, %v32_v19 }
  0xab   :  { %v61_v21 = vpack.c.bf16 %v41_v20, %v41_v20 }
  0xad   :  { %52 = vst.msk [vmem:[%s99_s2 + $0x4] sm:$0xf] %vm50_vm1, %v61_v21 }

// kernel: llama_forward.23
= control target key start
LH: loop header
LB: loop body
LE: loop exit
PB: predicated region body
PF: predicated region fallthrough
CT: control target
= control target key end

     0   :  { %vm19_vm0 = vcmask 261120   ;;  %v150_v0 = vmov 0.0   ;;  %vm151_vm1 = vmmov 0   ;;  %vm115_vm2 = vcmask 257024   ;;  %s195_s1 = inlined_call_operand.vmem [shape: bf16[32,32], index: 1, kind: input, shape index: {}]   ;;  %s196_s0 = inlined_call_operand.vmem [shape: bf16[16,32], index: 0, kind: input, shape index: {}]   ;;  %s197_s2 = inlined_call_operand.vmem [shape: bf16[16,32], index: 2, kind: input, shape index: {}]   ;;  %s198_s3 = inlined_call_operand.vmem [shape: bf16[16,32], index: 3, kind: output, shape index: {}]  }
   0x1   :  { %137 = vmatprep.subr.bf16.mxu0 %v150_v0  ;;  %v147_v1 = vld [vmem:[%s195_s1 + $0x8] sm:$0xff]   ;;  %141 = vmatprep.mubr.msk.bf16.mxu0 %vm151_vm1, %v150_v0  ;;  %20 = vst.msk [vmem:[#allocation2] sm:$0xff] %vm19_vm0, %v150_v0  ;;  %21 = vst.msk [vmem:[#allocation2 + $0x8] sm:$0xff] %vm19_vm0, %v150_v0  ;;  %v148_v2 = vld [vmem:[%s195_s1] sm:$0xff]  }
   0x2   :  { %138 = vmatpush3.bf16.msra.mxu0 %v147_v1  ;;  %v149_v3 = vld [vmem:[%s196_s0] sm:$0xff]  }
   0x3   :  { %139 = vmatprep.subr.bf16.mxu0 %v150_v0  ;;  %v131_v9 = vld [vmem:[%s197_s2] sm:$0xff]  }
   0x4   :  { %v132_v13 = vunpack.c.l.bf16 %v131_v9  ;;  %v133_v16 = vunpack.c.h.bf16 %v131_v9 }
   0x6   :  { %140 = vmatpush3.bf16.msra.mxu0 %v148_v2 }
   0x8   :  { %v22_v4 = vld [vmem:[#allocation2] sm:$0xff]  ;;  %v23_v8 = vld [vmem:[#allocation2 + $0x8] sm:$0xff] }
   0x9   :  { %142 = vmatmul.mubr.msk.bf16.vlgmr.msra.gmra.mxu0 %vm19_vm0, %v149_v3 }
  0xc9   :  { %v85_v5 = vpop.f32.mrf.mxu0 }
  0xca   :  { %v92_v6 = vadd.f32 %v85_v5, %v22_v4 }
  0xcb   :  { %v143_v7 = vpop.f32.mrf.mxu0 }
  0xcc   :  { %94 = vst.msk [vmem:[#allocation2] sm:$0xff] %vm19_vm0, %v92_v6 }
  0xcd   :  { %v88_v10 = vpop.f32.mrf.mxu0 }
  0xce   :  { %v93_v11 = vadd.f32 %v88_v10, %v23_v8 }
  0xcf   :  { %v144_v12 = vpop.f32.mrf.mxu0 }
  0xd0   :  { %95 = vst.msk [vmem:[#allocation2 + $0x8] sm:$0xff] %vm19_vm0, %v93_v11 }
  0xd3   :  { %v99_v14 = vld [vmem:[#allocation2] sm:$0xff] }
  0xd4   :  { %v105_v15 = vadd.f32 %v132_v13, %v99_v14 }
  0xd6   :  { %v128_v17 = vpack.c.bf16 %v105_v15, %v105_v15 }
  0xd7   :  { %v100_v18 = vld [vmem:[#allocation2 + $0x8] sm:$0xff] }
  0xd8   :  { %116 = vst.msk [vmem:[%s198_s3] sm:$0xf] %vm115_vm2, %v128_v17  ;;  %v106_v19 = vadd.f32 %v133_v16, %v100_v18 }
  0xda   :  { %v129_v20 = vpack.c.bf16 %v106_v19, %v106_v19 }
  0xdc   :  { %117 = vst.msk [vmem:[%s198_s3 + $0x4] sm:$0xf] %vm115_vm2, %v129_v20 }

// kernel: llama_forward.22
= control target key start
LH: loop header
LB: loop body
LE: loop exit
PB: predicated region body
PF: predicated region fallthrough
CT: control target
= control target key end

     0   :  { %s872_s12 = smov 0   ;;  %s874_s13 = smov 0   ;;  %s980_s0 = inlined_call_operand.vmem [shape: bf16[2,4,8,8], index: 0, kind: input, shape index: {}]   ;;  %s981_s1 = inlined_call_operand.vmem [shape: bf16[2,2,8,8], index: 1, kind: input, shape index: {}]   ;;  %s982_s2 = inlined_call_operand.vmem [shape: bf16[2,2,8,8], index: 2, kind: input, shape index: {}]   ;;  %s983_s3 = inlined_call_operand.vmem [shape: bf16[2,4,8,8], index: 3, kind: output, shape index: {}]  }
   0x1   :  { %s876_s14 = smov 0   ;;  %s878_s15 = smov 0  }
   0x2   :  { %s880_s16 = smov 0   ;;  %s882_s17 = smov 0  }
   0x3   :  { %s884_s18 = smov 0  }
   0x4 LB: > { %s38_s19 = sadd.s32 1, %s834_s15  ;;  %s42_s20 = sadd.s32 1, %s838_s16  ;;  %s846_s18 = sphi %s884_s18, %s13_s18   ;;  %s842_s17 = sphi %s882_s17, %s989_s17   ;;  %s838_s16 = sphi %s880_s16, %s988_s16   ;;  %s834_s15 = sphi %s878_s15, %s987_s15   ;;  %s830_s14 = sphi %s876_s14, %s986_s14   ;;  %s826_s13 = sphi %s874_s13, %s985_s13   ;;  %s822_s12 = sphi %s872_s12, %s984_s12  }
   0x5   : > { %p40_p0 = scmp.ge.s32.totalorder %s38_s19, 2  ;;  %p693_p1 = scmp.ge.s32.totalorder %s846_s18, 1 }
   0x6   : > { %p236_p2 = scmp.lt.s32.totalorder %s846_s18, 9  ;;  %s46_s21 = sadd.s32 1, %s842_s17 }
   0x7   : > { %s991_s19 = smov (%p40_p0, %s38_s19), 0  ;;  %s993_s20 = smov (!%p40_p0, %s42_s20), %s838_s16 }
   0x8   : > { %p237_p3 = pnand %p693_p1, %p236_p2  ;;  %p44_p4 = scmp.ge.s32.totalorder %s993_s20, 2 }
   0x9   : > { %p300_p6 = scmp.lt.s32.totalorder (!%p237_p3), %s830_s14, 1  ;;  %p315_p7 = scmp.lt.s32.totalorder (!%p237_p3), %s826_s13, 1 }
   0xa   : > { %s995_s20 = smov (%p44_p4, %s993_s20), 0  ;;  %s997_s21 = smov (!%p44_p4, %s46_s21), %s842_s17 }
   0xb   : > { %p48_p5 = scmp.ge.s32.totalorder %s997_s21, 2  ;;  %240 = sbr.rel (%p237_p3) target bundleno = 801 (0x321), region = 32 }
   0xc   : > { %s694_s22 = sshll.u32 (!%p237_p3), %s826_s13, 1 }
   0xd   : > { %s999_s21 = smov (%p48_p5, %s997_s21), 0  ;;  %s299_s24 = sadd.s32 (!%p237_p3), %s822_s12, %s694_s22 }
   0xe   : > { %p302_p8 = scmp.lt.s32.totalorder (!%p237_p3), %s299_s24, 3 }
  0x10   : > { %vm358_vm0 = vcmask 64512   ;;  %v848_v0 = vmov 0.0   ;;  %vm849_vm1 = vmmov 0   ;;  %s1001_s14 = smov (!%p300_p6, %s830_s14), 1  ;;  %s1003_s13 = smov (!%p315_p7, %s826_s13), 1  ;;  %vm355_vm2 = vcmask 7168  }
  0x11   : > { %712 = vmatprep.subr.bf16.mxu0 %v848_v0  ;;  %359 = vst.msk [vmem:[#allocation4] sm:$0xff] %vm358_vm0, %v848_v0  ;;  %714 = vmatprep.mubr.msk.bf16.mxu0 %vm849_vm1, %v848_v0  ;;  %s697_s23 = sshll.u32 %s1001_s14, 1  ;;  %s695_s30 = sshll.u32 %s1001_s14, 2  ;;  %v850_v4 = vmov -1e+30   ;;  %v417_v5 = vlaneseq  ;;  %v851_v15 = vmov 0  }
  0x12   : > { %718 = vmatprep.subr.bf16.mxu1 %v848_v0  ;;  %720 = vmatprep.mubr.msk.bf16.mxu1 %vm849_vm1, %v848_v0  ;;  %s923_s25 = sadd.s32 %s697_s23, %s1003_s13  ;;  %s1005_s24 = smov (!%p302_p8, %s299_s24), 3  ;;  %356 = vst.msk [vmem:[#allocation2] sm:$0xff] %vm355_vm2, %v850_v4  ;;  %357 = vst.msk [vmem:[#allocation3] sm:$0xff] %vm355_vm2, %v848_v0  ;;  %vm463_vm4 = vcmask 1043456   ;;  %vm523_vm5 = vcmask 60416  }
  0x13   : > { %s698_s26 = sshll.u32 %s923_s25, 2  ;;  %s932_s4 = sadd.s32 %s695_s30, %s1005_s24  ;;  %v418_v6 = vshrl.u32 %v417_v5, 7  ;;  %v422_v7 = vand.u32 127, %v417_v5  ;;  %784 = vset.pattern.permute.xlu0 %v851_v15  ;;  %785 = vset.pattern.permute.xlu1 %v851_v15 }
  0x14   : > { %s323_s29 = scalar_lea.vmem %s981_s1, %s698_s26  ;;  %s696_s5 = sshll.u32 %s932_s4, 2 }
  0x15   : > { %v368_v1 = vld [vmem:[%s323_s29] sm:$0xf]  ;;  %s310_s8 = scalar_lea.vmem %s980_s0, %s696_s5  ;;  %vm425_vm3 = vcmp.le.s32.totalorder %v422_v7, %v418_v6  ;;  %s334_s11 = scalar_lea.vmem %s982_s2, %s698_s26 }
  0x16   : > { %v374_v2 = vsel %vm358_vm0, %v368_v1, 0  ;;  %v367_v3 = vld [vmem:[%s310_s8] sm:$0xf]  ;;  %s347_s14 = scalar_lea.vmem %s983_s3, %s696_s5 }
  0x17   : > { %713 = vmatpush3.bf16.xpose.msra.mxu0 %v374_v2  ;;  %v459_v20 = vld [vmem:[%s334_s11] sm:$0xf] }
  0x18   : > { %v465_v21 = vsel %vm463_vm4, %v459_v20, 0  ;;  %v451_v36 = vld [vmem:[#allocation4] sm:$0xff] }
  0x19   : > { %v427_v16 = vld [vmem:[#allocation2] sm:$0xff]  ;;  %719 = vmatpush3.bf16.msra.mxu1 %v465_v21  ;;  %v443_v30 = vld [vmem:[#allocation3] sm:$0xff] }
  0x1e   : > { %715 = vmatmul.mubr.msk.bf16.vlgmr.msra.gmra.mxu0 %vm358_vm0, %v367_v3 }
  0xde   : > { %v410_v8 = vpop.f32.mrf.mxu0 }
  0xdf   : > { %v416_v9 = vmul.f32 0.35355338, %v410_v8 }
  0xe0   : > { %v716_v10 = vpop.f32.mrf.mxu0 }
  0xe1   : > { %v426_v11 = vsel %vm425_vm3, %v416_v9, -1e+30 }
  0xe2   : > { %v413_v12 = vpop.f32.mrf.mxu0  ;;  %v428_v13 = vsel %vm358_vm0, %v426_v11, -inf }
  0xe3   : > { %429 = vmax.xlane.f32.xlu0 %v428_v13 }
  0xe4   : > { %v717_v14 = vpop.f32.mrf.mxu0 }
 0x16c   : > { %v430_v17 = vpop.xlane.xlu0 %429 }
 0x16d   : > { %v431_v18 = vmax.f32 %v427_v16, %v430_v17 }
 0x16f   : > { %v432_v19 = vsub.f32 %v427_v16, %v431_v18  ;;  %509 = vst.msk [vmem:[#allocation2] sm:$0xff] %vm355_vm2, %v431_v18  ;;  %437 = vperm.xlu0 %784, %v431_v18  }
 0x171   : > { %v433_v26 = vmul.f32 1.442695, %v432_v19 }
 0x1ea   : > { %v438_v22 = vpop.permute.xlu0 %437 }
 0x1eb   : > { %v440_v23 = vsub.f32 %v426_v11, %v438_v22 }
 0x1ed   : > { %v441_v24 = vmul.f32 1.442695, %v440_v23 }
 0x1ef   : > { %786 = vpow2.f32 %v441_v24 }
 0x1f0   : > { %788 = vpow2.f32 %v433_v26 }
 0x1fc   : > { %v787_v25 = vpop.eup %786 }
 0x1fd   : > { %v445_v27 = vsel %vm358_vm0, %v787_v25, 0.0  ;;  %v458_v28 = vpack.c.bf16 %v787_v25, %v787_v25  ;;  %v789_v29 = vpop.eup %788 }
 0x1fe   : > { %446 = vadd.xlane.f32.xlu1 %v445_v27  ;;  %v444_v31 = vmul.f32 %v789_v29, %v443_v30 }
 0x1ff   : > { %721 = vmatmul.mubr.msk.bf16.vlgmr.msra.gmra.mxu1 %vm358_vm0, %v458_v28 }
 0x20f   : > { %454 = vperm.xlu1 %785, %v789_v29  }
 0x287   : > { %v447_v32 = vpop.xlane.xlu1 %446 }
 0x288   : > { %v448_v33 = vadd.f32 %v447_v32, %v444_v31 }
 0x28a   : > { %450 = vst.msk [vmem:[#allocation3] sm:$0xff] %vm355_vm2, %v448_v33 }
 0x28b   : > { %v455_v37 = vpop.permute.xlu1 %454 }
 0x28c   : > { %v457_v38 = vmul.f32 %v455_v37, %v451_v36 }
 0x291   : > { %v514_v34 = vld [vmem:[#allocation3] sm:$0xff] }
 0x292   : > { %790 = vrcp.f32 %v514_v34 }
 0x29f   : > { %v791_v35 = vpop.eup %790 }
 0x2a0   : > { %518 = vperm.xlu1 %785, %v791_v35  }
 0x2bf   : > { %v501_v39 = vpop.f32.mrf.mxu1 }
 0x2c0   : > { %v507_v40 = vadd.f32 %v501_v39, %v457_v38 }
 0x2c1   : > { %v722_v41 = vpop.f32.mrf.mxu1 }
 0x2c2   : > { %508 = vst.msk [vmem:[#allocation4] sm:$0xff] %vm358_vm0, %v507_v40 }
 0x2c3   : > { %v504_v42 = vpop.f32.mrf.mxu1 }
 0x2c5   : > { %v723_v43 = vpop.f32.mrf.mxu1 }
 0x2c9   : > { %v513_v44 = vld [vmem:[#allocation4] sm:$0xff] }
 0x31b   : > { %v519_v45 = vpop.permute.xlu1 %518 }
 0x31c   : > { %v521_v46 = vmul.f32 %v519_v45, %v513_v44 }
 0x31e   : > { %v522_v47 = vpack.c.bf16 %v521_v46, %v521_v46 }
 0x320   : > { %524 = vst.msk [vmem:[%s347_s14] sm:$0xf] %vm523_vm5, %v522_v47 }
 0x321 PF: > { %s13_s18 = sadd.s32 1, %s846_s18   ;;  %s984_s12 = smov %s834_s15 }
 0x322   : > { %p10_p9 = scmp.ge.s32.totalorder %s13_s18, 10   ;;  %s985_s13 = smov %s838_s16 }
 0x323   : > { %s986_s14 = smov %s842_s17  ;;  %s987_s15 = smov %s991_s19 }
 0x324   : > { %s988_s16 = smov %s995_s20  ;;  %s989_s17 = smov %s999_s21 }
 0x325   :  { %12 = sbr.rel (!%p10_p9) target bundleno = 4 (0x4), region = 80 }

// kernel: llama_forward.35
= control target key start
LH: loop header
LB: loop body
LE: loop exit
PB: predicated region body
PF: predicated region fallthrough
CT: control target
= control target key end

     0   :  { %v161_v1 = vmov 0.0   ;;  %vm162_vm0 = vmmov 0   ;;  %s193_s0 = inlined_call_operand.vmem [shape: bf16[16,32], index: 0, kind: input, shape index: {}]   ;;  %s194_s1 = inlined_call_operand.vmem [shape: bf16[32,128], index: 1, kind: input, shape index: {}]   ;;  %s195_s2 = inlined_call_operand.hbm [shape: f32[16,128], index: 2, kind: output, shape index: {}]  }
   0x1   :  { %v136_v0 = vld [vmem:[%s194_s1 + $0x8] sm:$0xff]   ;;  %123 = vmatprep.subr.bf16.mxu0 %v161_v1  ;;  %v137_v2 = vld [vmem:[%s194_s1] sm:$0xff]   ;;  %127 = vmatprep.mubr.msk.bf16.mxu0 %vm162_vm0, %v161_v1 }
   0x2   :  { %124 = vmatpush3.bf16.msra.mxu0 %v136_v0 }
   0x3   :  { %125 = vmatprep.subr.bf16.mxu0 %v161_v1 }
   0x4   :  { %7 = vsyncpa [#allocation4], 0  ;;  %v138_v3 = vld [vmem:[%s193_s0] sm:$0xff]   ;;  %vm44_vm1 = vcmask 261120   ;;  %s163_s15 = smov [#allocation3]  }
   0x5   :  { %s105_s16 = sshll.u32 %s163_s15, 4  ;;  %s106_s16 = int_to_ptr.vmem [resolvable:$true] %s105_s16 }
   0x6   :  { %126 = vmatpush3.bf16.msra.mxu0 %v137_v2  ;;  %s139_s1 = scalar_lea.vmem %s106_s16, 256  ;;  %p144_p1 = scmp.lt.s32.totalorder %s106_s16, %s106_s16 }
   0x7   :  { %p140_p0 = scmp.ne.s32.totalorder %s106_s16, %s139_s1  ;;  %p145_p2 = scmp.lt.s32.totalorder %s139_s1, %s139_s1 }
   0x9   :  { %128 = vmatmul.mubr.msk.bf16.vlgmr.msra.gmra.mxu0 %vm44_vm1, %v138_v3  ;;  %p146_p3 = por %p145_p2, %p144_p1 }
   0xb   :  { %p147_p4 = pnand %p146_p3, %p140_p0 }
  0xc9   :  { %v82_v4 = vpop.f32.mrf.mxu0 }
  0xca   :  { %98 = vst [vmem:[#allocation3] sm:$0xff] %v82_v4 }
  0xcb   :  { %v129_v5 = vpop.f32.mrf.mxu0 }
  0xcd   :  { %v85_v6 = vpop.f32.mrf.mxu0 }
  0xce   :  { %99 = vst [vmem:[#allocation3 + $0x8] sm:$0xff] %v85_v6 }
  0xcf   :  { %v130_v7 = vpop.f32.mrf.mxu0 }
  0xd0   :  { %150 = shalt.err (!%p147_p4)
}
  0xd1   :  { %s164_s0 = smov 128   ;;  %s165_s17 = smov 8  }
  0xd2   :  { %111 = dma.vmem_to_hbm [thread:$0]  %s106_s16, 256, %s195_s2, [#allocation4], %s164_s0, %s164_s0, %s165_s17  }
  0xd3   :  { %159 = dma.done.wait [#allocation4], 256  }
  0xd4   :  { %160 = vsyncadd [#allocation4], 4294967040 }
  0xd5   :  { %115 = vsyncpa [#allocation4], 1 }

// kernel: llama_forward.25
= control target key start
LH: loop header
LB: loop body
LE: loop exit
PB: predicated region body
PF: predicated region fallthrough
CT: control target
= control target key end

     0   :  { %vm25_vm0 = vcmask 261120   ;;  %v359_v0 = vmov 0.0   ;;  %vm360_vm1 = vmmov 0   ;;  %vm204_vm2 = vcmask 523264   ;;  %s436_s1 = inlined_call_operand.vmem [shape: bf16[32,64], index: 1, kind: input, shape index: {}]   ;;  %s437_s0 = inlined_call_operand.vmem [shape: bf16[16,32], index: 0, kind: input, shape index: {}]   ;;  %s438_s2 = inlined_call_operand.vmem [shape: bf16[32,64], index: 2, kind: input, shape index: {}]   ;;  %s439_s3 = inlined_call_operand.vmem [shape: bf16[64,32], index: 3, kind: input, shape index: {}]   ;;  %s440_s4 = inlined_call_operand.vmem [shape: bf16[16,32], index: 4, kind: input, shape index: {}]   ;;  %s441_s5 = inlined_call_operand.vmem [shape: bf16[16,32], index: 5, kind: output, shape index: {}]  }
   0x1   :  { %312 = vmatprep.subr.bf16.mxu1 %v359_v0  ;;  %v342_v1 = vld [vmem:[%s436_s1 + $0x8] sm:$0xff]   ;;  %316 = vmatprep.mubr.msk.bf16.mxu1 %vm360_vm1, %v359_v0  ;;  %26 = vst.msk [vmem:[#allocation2] sm:$0xff] %vm25_vm0, %v359_v0  ;;  %27 = vst.msk [vmem:[#allocation2 + $0x8] sm:$0xff] %vm25_vm0, %v359_v0  ;;  %v343_v2 = vld [vmem:[%s436_s1] sm:$0xff]   ;;  %vm272_vm3 = vcmask 257024  }
   0x2   :  { %328 = vmatprep.subr.bf16.mxu0 %v359_v0  ;;  %336 = vmatprep.mubr.msk.bf16.mxu0 %vm360_vm1, %v359_v0  ;;  %v344_v3 = vld [vmem:[%s437_s0] sm:$0xff]   ;;  %v345_v4 = vld [vmem:[%s438_s2 + $0x8] sm:$0xff]   ;;  %v347_v6 = vld [vmem:[%s439_s3 + $0x18] sm:$0xff]  }
   0x3   :  { %313 = vmatpush3.bf16.msra.mxu1 %v342_v1  ;;  %v346_v5 = vld [vmem:[%s438_s2] sm:$0xff]   ;;  %329 = vmatpush3.bf16.msra.mxu0 %v347_v6  ;;  %v348_v7 = vld [vmem:[%s439_s3 + $0x10] sm:$0xff]   ;;  %v349_v8 = vld [vmem:[%s439_s3 + $0x8] sm:$0xff]  }
   0x4   :  { %314 = vmatprep.subr.bf16.mxu1 %v359_v0  ;;  %330 = vmatprep.subr.bf16.mxu0 %v359_v0  ;;  %v350_v9 = vld [vmem:[%s439_s3] sm:$0xff]  }
   0x5   :  { %v298_v36 = vld [vmem:[%s440_s4] sm:$0xff]  }
   0x6   :  { %v299_v40 = vunpack.c.l.bf16 %v298_v36  ;;  %v300_v43 = vunpack.c.h.bf16 %v298_v36 }
   0x7   :  { %315 = vmatpush3.bf16.msra.mxu1 %v343_v2  ;;  %331 = vmatpush3.bf16.msra.mxu0 %v348_v7 }
   0x8   :  { %320 = vmatprep.subr.bf16.mxu1 %v359_v0  ;;  %332 = vmatprep.subr.bf16.mxu0 %v359_v0  ;;  %v169_v31 = vld [vmem:[#allocation2] sm:$0xff]  ;;  %v170_v35 = vld [vmem:[#allocation2 + $0x8] sm:$0xff] }
   0xa   :  { %317 = vmatmul.mubr.msk.bf16.vlgmr.msra.gmra.mxu1 %vm25_vm0, %v344_v3 }
   0xb   :  { %321 = vmatpush3.bf16.msra.mxu1 %v345_v4  ;;  %324 = vmatprep.mubr.msk.bf16.mxu1 %vm360_vm1, %v359_v0 }
   0xc   :  { %322 = vmatprep.subr.bf16.mxu1 %v359_v0  ;;  %333 = vmatpush3.bf16.msra.mxu0 %v349_v8 }
   0xd   :  { %334 = vmatprep.subr.bf16.mxu0 %v359_v0 }
   0xf   :  { %323 = vmatpush3.bf16.msra.mxu1 %v346_v5 }
  0x10   :  { %335 = vmatpush3.bf16.msra.mxu0 %v350_v9 }
  0x12   :  { %325 = vmatmul.mubr.msk.bf16.vlgmr.msra.gmra.mxu1 %vm25_vm0, %v344_v3 }
  0xca   :  { %v89_v10 = vpop.f32.mrf.mxu1 }
  0xcb   :  { %v286_v11 = vmul.f32 -1.442695, %v89_v10 }
  0xcc   :  { %v318_v12 = vpop.f32.mrf.mxu1 }
  0xcd   :  { %351 = vpow2.f32 %v286_v11 }
  0xce   :  { %v92_v13 = vpop.f32.mrf.mxu1 }
  0xcf   :  { %v287_v14 = vmul.f32 -1.442695, %v92_v13 }
  0xd0   :  { %v319_v15 = vpop.f32.mrf.mxu1 }
  0xd1   :  { %353 = vpow2.f32 %v287_v14 }
  0xd2   :  { %v146_v16 = vpop.f32.mrf.mxu1 }
  0xd4   :  { %v326_v17 = vpop.f32.mrf.mxu1 }
  0xd6   :  { %v149_v18 = vpop.f32.mrf.mxu1 }
  0xd8   :  { %v327_v19 = vpop.f32.mrf.mxu1 }
  0xda   :  { %v352_v20 = vpop.eup %351 }
  0xdb   :  { %v159_v21 = vadd.f32 1.0, %v352_v20 }
  0xdd   :  { %355 = vrcp.f32 %v159_v21 }
  0xde   :  { %v354_v22 = vpop.eup %353 }
  0xdf   :  { %v160_v23 = vadd.f32 1.0, %v354_v22 }
  0xe1   :  { %357 = vrcp.f32 %v160_v23 }
  0xea   :  { %v356_v24 = vpop.eup %355 }
  0xeb   :  { %v165_v25 = vmul.f32 %v356_v24, %v89_v10 }
  0xed   :  { %v167_v28 = vmul.f32 %v165_v25, %v146_v16 }
  0xee   :  { %v358_v26 = vpop.eup %357 }
  0xef   :  { %v166_v27 = vmul.f32 %v358_v26, %v92_v13 }
  0xf1   :  { %v168_v29 = vmul.f32 %v166_v27, %v149_v18 }
  0xf3   :  { %v171_v30 = vpack.c.bf16 %v168_v29, %v167_v28 }
  0xf5   :  { %337 = vmatmul.mubr.msk.bf16.vlgmr.msra.gmra.mxu0 %vm204_vm2, %v171_v30 }
 0x1b5   :  { %v242_v32 = vpop.f32.mrf.mxu0 }
 0x1b6   :  { %v249_v33 = vadd.f32 %v242_v32, %v169_v31 }
 0x1b7   :  { %v338_v34 = vpop.f32.mrf.mxu0 }
 0x1b8   :  { %251 = vst.msk [vmem:[#allocation2] sm:$0xff] %vm25_vm0, %v249_v33 }
 0x1b9   :  { %v245_v37 = vpop.f32.mrf.mxu0 }
 0x1ba   :  { %v250_v38 = vadd.f32 %v245_v37, %v170_v35 }
 0x1bb   :  { %v339_v39 = vpop.f32.mrf.mxu0 }
 0x1bc   :  { %252 = vst.msk [vmem:[#allocation2 + $0x8] sm:$0xff] %vm25_vm0, %v250_v38 }
 0x1bf   :  { %v256_v41 = vld [vmem:[#allocation2] sm:$0xff] }
 0x1c0   :  { %v262_v42 = vadd.f32 %v299_v40, %v256_v41 }
 0x1c2   :  { %v295_v44 = vpack.c.bf16 %v262_v42, %v262_v42 }
 0x1c3   :  { %v257_v45 = vld [vmem:[#allocation2 + $0x8] sm:$0xff] }
 0x1c4   :  { %273 = vst.msk [vmem:[%s441_s5] sm:$0xf] %vm272_vm3, %v295_v44  ;;  %v263_v46 = vadd.f32 %v300_v43, %v257_v45 }
 0x1c6   :  { %v296_v47 = vpack.c.bf16 %v263_v46, %v263_v46 }
 0x1c8   :  { %274 = vst.msk [vmem:[%s441_s5 + $0x4] sm:$0xf] %vm272_vm3, %v296_v47 }

</bundles_post_ra>
